<compile_context>
chip_gen: v7x
topology: tpu7x:2x2x1
jax: 0.10.0
libtpu: 0.0.40
codegen_flags: <defaults>
</compile_context>

<pallas_src>
import jax
import jax.numpy as jnp
from jax import lax
from jax.experimental import pallas as pl
from jax.experimental.pallas import tpu as pltpu

SCALE = 20.0
EPS = 1e-12  # torch.nn.functional.normalize eps (used by cos_sim)


def _mnrl_lse_kernel(a_ref, b_ref, lse_ref, m_ref, l_ref):
    """Per-row log-sum-exp of the scaled cosine-similarity logits.

    Grid (row_tiles, col_tiles): row axis "parallel", column axis is an
    online-softmax reduction ("arbitrary", innermost).
      a_ref : (t_r, D) bf16 -- L2-normalized `embs` rows, pre-scaled by SCALE.
      b_ref : (t_c, D) bf16 -- L2-normalized `other_embs` rows.
      lse_ref : (t_r, 1) f32 output (written on the last column step).
      m_ref / l_ref : (t_r, 1) f32 running max / running sum-exp scratch.
    """
    j = pl.program_id(1)

    @pl.when(j == 0)
    def _init():
        m_ref[...] = jnp.full(m_ref.shape, -jnp.inf, dtype=m_ref.dtype)
        l_ref[...] = jnp.zeros(l_ref.shape, dtype=l_ref.dtype)

    # bf16 x bf16 -> f32 MXU matmul, contracting D vs D (no operand transpose).
    s = lax.dot_general(
        a_ref[...], b_ref[...], (((1,), (1,)), ((), ())),
        preferred_element_type=jnp.float32,
    )                                                       # (t_r, t_c) f32

    # Online log-sum-exp along the column tiles.
    m_prev = m_ref[...]
    m_new = jnp.maximum(m_prev, jnp.max(s, axis=-1, keepdims=True))
    l_ref[...] = (l_ref[...] * jnp.exp(m_prev - m_new)
                  + jnp.sum(jnp.exp(s - m_new), axis=-1, keepdims=True))
    m_ref[...] = m_new

    @pl.when(j == pl.num_programs(1) - 1)
    def _finalize():
        lse_ref[...] = m_ref[...] + jnp.log(l_ref[...])


def _l2_normalize(x):
    x = x.astype(jnp.float32)
    ssq = jnp.sum(x * x, axis=-1, keepdims=True)
    return x * lax.rsqrt(jnp.maximum(ssq, EPS * EPS))


def _pick_tile(n, pref):
    """Largest multiple-of-8 tile <= pref that divides n (or n itself)."""
    if n <= pref:
        return n
    t = (min(pref, n) // 8) * 8
    while t >= 8 and n % t != 0:
        t -= 8
    if t < 8:
        # TODO(synk): pad ragged batch sizes (padded logits must be masked to
        # -inf before the LSE and padded rows dropped from the mean).
        raise ValueError(f"batch size {n} has no multiple-of-8 tile <= {pref}")
    return t


def _vmem_capacity_bytes():
    try:
        return int(pltpu.get_tpu_info().vmem_capacity_bytes)
    except Exception:
        return 64 * 1024 * 1024  # v7x per-TensorCore: the most restrictive


def multiple_negatives_ranking_loss(embs, other_embs, *, scale=SCALE,
                                     tile_row=256, tile_col=256,
                                     resident_limit_bytes=None):
    # TODO(synk): explicit non-arange `labels` are not supported; the module's
    # default labels == arange(B) (in-batch negatives) is assumed.
    assert embs.shape == other_embs.shape
    assert embs.ndim == 2
    B, D = embs.shape

    # Hoisted normalization (+ SCALE folded into one operand) and bf16 cast.
    a_bf = (_l2_normalize(embs) * scale).astype(jnp.bfloat16)
    b_bf = _l2_normalize(other_embs).astype(jnp.bfloat16)

    # labels == arange(B): the target logit is the (scaled) diagonal of the
    # similarity matrix; compute it as an O(B*D) row-wise dot from the same
    # bf16-rounded operands the kernel's MXU consumes.
    tgt = jnp.sum(a_bf.astype(jnp.float32) * b_bf.astype(jnp.float32), axis=-1)

    phys_vmem = _vmem_capacity_bytes()
    if resident_limit_bytes is None:
        # Keep other_embs fully VMEM-resident (single column block) when its
        # pipelined footprint stays well under the per-core VMEM capacity.
        resident_limit_bytes = phys_vmem // 4

    t_r = _pick_tile(B, tile_row)
    t_c = B if (B * D * 2) <= resident_limit_bytes else _pick_tile(B, tile_col)
    n_r, n_c = B // t_r, B // t_c
    # TODO(synk): on v7x (2 TensorCores) prefer t_r such that n_r is even for
    # megacore load balance; needs a reliable per-generation core-count query.

    # 3-deep pipeline on streamed b tiles hides the exposed per-step DMA at
    # modest column tiles; skip when b is resident / nearly so (saves VMEM).
    if n_c >= 3:
        b_bufs = 3
        b_spec = pl.BlockSpec((t_c, D), lambda i, j: (j, 0),
                              pipeline_mode=pl.Buffered(3))
    else:
        b_bufs = 2
        b_spec = pl.BlockSpec((t_c, D), lambda i, j: (j, 0))

    # VMEM budget from the real footprint, capped under physical capacity.
    needed = (2 * t_r * D * 2            # a block, double-buffered bf16
              + b_bufs * t_c * D * 2     # b block(s), bf16
              + 2 * t_r * 128 * 4        # (t_r,1) output, lane-padded, 2 bufs
              + 2 * t_r * 128 * 4        # m/l scratch, lane-padded
              + 4 * t_r * t_c * 4)       # s / exp(s) f32 intermediates
    vmem_limit = int(min(0.9 * phys_vmem,
                         max(32 * 1024 * 1024, int(needed * 1.25))))

    cost = pl.CostEstimate(
        flops=2 * B * B * D,
        transcendentals=B * B,
        bytes_accessed=(1 + (1 if t_c == B else n_r)) * B * D * 2 + B * 4,
    )

    lse = pl.pallas_call(
        _mnrl_lse_kernel,
        out_shape=jax.ShapeDtypeStruct((B, 1), jnp.float32),
        grid_spec=pltpu.PrefetchScalarGridSpec(
            num_scalar_prefetch=0,
            grid=(n_r, n_c),
            in_specs=[
                pl.BlockSpec((t_r, D), lambda i, j: (i, 0)),   # embs row tile
                b_spec,                                        # other_embs tile
            ],
            out_specs=pl.BlockSpec((t_r, 1), lambda i, j: (i, 0)),
            scratch_shapes=[
                pltpu.VMEM((t_r, 1), jnp.float32),   # running max
                pltpu.VMEM((t_r, 1), jnp.float32),   # running sum-exp
            ],
        ),
        compiler_params=pltpu.CompilerParams(
            dimension_semantics=("parallel", "arbitrary"),
            vmem_limit_bytes=vmem_limit,
        ),
        cost_estimate=cost,
    )(a_bf, b_bf)

    # Per-row cross-entropy: logsumexp - target logit; mean over the batch.
    return jnp.mean(lse[:, 0] - tgt)


def _reference(embs, other_embs, *, scale=SCALE, quantize=False):
    """Pure-JAX reference. quantize=True rounds operands exactly like the
    kernel (bf16 inputs, f32 accumulation) for a tight numerical check."""
    a = _l2_normalize(embs) * scale
    b = _l2_normalize(other_embs)
    if quantize:
        a = a.astype(jnp.bfloat16).astype(jnp.float32)
        b = b.astype(jnp.bfloat16).astype(jnp.float32)
    logits = jnp.dot(a, b.T, precision=lax.Precision.HIGHEST)
    n = logits.shape[0]
    logprobs = jax.nn.log_softmax(logits, axis=-1)
    return -jnp.mean(logprobs[jnp.arange(n), jnp.arange(n)])


def _check(loss, embs, other_embs, name):
    ref_q = _reference(embs, other_embs, quantize=True)   # same bf16 rounding
    ref_f = _reference(embs, other_embs, quantize=False)  # full f32 reference
    assert jnp.allclose(loss, ref_q, atol=2e-3, rtol=2e-3), (name, loss, ref_q)
    assert jnp.allclose(loss, ref_f, atol=2e-2, rtol=2e-2), (name, loss, ref_f)


if __name__ == "__main__":
    key = jax.random.PRNGKey(0)
    k1, k2 = jax.random.split(key)

    # 1) Default path: other_embs fits VMEM -> fully resident, grid (1, 1).
    B, D = 256, 128
    embs = jax.random.normal(k1, (B, D), dtype=jnp.float32)
    other_embs = jax.random.normal(k2, (B, D), dtype=jnp.float32)
    loss = multiple_negatives_ranking_loss(embs, other_embs)
    jax.block_until_ready(loss)
    _check(loss, embs, other_embs, "resident")

    # 2) Forced streamed path: multi-tile online LSE + Buffered(3) b pipeline.
    B2, D2 = 512, 64
    e2 = jax.random.normal(k1, (B2, D2), dtype=jnp.float32)
    o2 = jax.random.normal(k2, (B2, D2), dtype=jnp.float32)
    loss2 = multiple_negatives_ranking_loss(
        e2, o2, tile_row=128, tile_col=128, resident_limit_bytes=0)
    jax.block_until_ready(loss2)
    _check(loss2, e2, o2, "streamed")

    # 3) Tiny sub-tile case (single block, full-array dims).
    e3 = jax.random.normal(k1, (8, 32), dtype=jnp.float32)
    o3 = jax.random.normal(k2, (8, 32), dtype=jnp.float32)
    loss3 = multiple_negatives_ranking_loss(e3, o3)
    jax.block_until_ready(loss3)
    _check(loss3, e3, o3, "tiny")

    print("KERNEL_OK")
</pallas_src>

<mosaic_0001>
module attributes {stable_mosaic.version = 11 : i64} {
  func.func @_mnrl_lse_kernel(%arg0: i32, %arg1: i32, %arg2: memref<256x128xbf16, #tpu.memory_space<vmem>>, %arg3: memref<256x128xbf16, #tpu.memory_space<vmem>>, %arg4: memref<256x1xf32, #tpu.memory_space<vmem>>, %arg5: memref<256x1xf32, #tpu.memory_space<vmem>>, %arg6: memref<256x1xf32, #tpu.memory_space<vmem>>) attributes {dimension_semantics = [#tpu.dimension_semantics<parallel>, #tpu.dimension_semantics<arbitrary>], iteration_bounds = array<i64: 1, 1>, scalar_prefetch = 0 : i64, scratch_operands = 2 : i64, tpu.core_type = #tpu.core_type<tc>, window_params = [{transform_indices = @transform_0, window_bounds = array<i64: 256, 128>}, {transform_indices = @transform_1, window_bounds = array<i64: 256, 128>}, {transform_indices = @transform_2, window_bounds = array<i64: 256, 1>}]} {
    %c0_i32 = arith.constant 0 : i32
    %0 = arith.cmpi eq, %arg1, %c0_i32 : i32
    %1 = arith.extui %0 : i1 to i32
    %c0_i32_0 = arith.constant 0 : i32
    %2 = arith.cmpi ne, %1, %c0_i32_0 : i32
    scf.if %2 {
      %cst_16 = arith.constant 0xFF800000 : f32
      %25 = vector.broadcast %cst_16 : f32 to vector<256x1xf32>
      %c0_17 = arith.constant 0 : index
      %c0_18 = arith.constant 0 : index
      %26 = vector.load %arg5[%c0_17, %c0_18] : memref<256x1xf32, #tpu.memory_space<vmem>>, vector<256x1xf32>
      tpu.vector_store %arg5[%c0_17, %c0_18], %25 {strides = array<i32>} : memref<256x1xf32, #tpu.memory_space<vmem>>, vector<256x1xf32>,
      %cst_19 = arith.constant 0.000000e+00 : f32
      %27 = vector.broadcast %cst_19 : f32 to vector<256x1xf32>
      %c0_20 = arith.constant 0 : index
      %c0_21 = arith.constant 0 : index
      %28 = vector.load %arg6[%c0_20, %c0_21] : memref<256x1xf32, #tpu.memory_space<vmem>>, vector<256x1xf32>
      tpu.vector_store %arg6[%c0_20, %c0_21], %27 {strides = array<i32>} : memref<256x1xf32, #tpu.memory_space<vmem>>, vector<256x1xf32>,
    } else {
    }
    %c0 = arith.constant 0 : index
    %c0_1 = arith.constant 0 : index
    %3 = vector.load %arg2[%c0, %c0_1] : memref<256x128xbf16, #tpu.memory_space<vmem>>, vector<256x128xbf16>
    %c0_2 = arith.constant 0 : index
    %c0_3 = arith.constant 0 : index
    %4 = vector.load %arg3[%c0_2, %c0_3] : memref<256x128xbf16, #tpu.memory_space<vmem>>, vector<256x128xbf16>
    %cst = arith.constant dense<0.000000e+00> : vector<256x256xf32>
    %5 = tpu.matmul %3, %4, %cst {dimension_numbers = #tpu.dot_dimension_numbers<[1], [1], [0], [0], [0, 0, 1, 0], [], []>} : vector<256x128xbf16>, vector<256x128xbf16>, vector<256x256xf32> -> vector<256x256xf32>
    %c0_4 = arith.constant 0 : index
    %c0_5 = arith.constant 0 : index
    %6 = vector.load %arg5[%c0_4, %c0_5] : memref<256x1xf32, #tpu.memory_space<vmem>>, vector<256x1xf32>
    %cst_6 = arith.constant dense<0xFF800000> : vector<256xf32>
    %7 = vector.multi_reduction <maximumf>, %5, %cst_6 [1] : vector<256x256xf32> to vector<256xf32>
    %8 = vector.shape_cast %7 : vector<256xf32> to vector<256x1xf32>
    %9 = arith.maximumf %6, %8 : vector<256x1xf32>
    %c0_7 = arith.constant 0 : index
    %c0_8 = arith.constant 0 : index
    %10 = vector.load %arg6[%c0_7, %c0_8] : memref<256x1xf32, #tpu.memory_space<vmem>>, vector<256x1xf32>
    %11 = arith.subf %6, %9 : vector<256x1xf32>
    %12 = math.exp %11 : vector<256x1xf32>
    %13 = arith.mulf %10, %12 : vector<256x1xf32>
    %14 = vector.broadcast %9 : vector<256x1xf32> to vector<256x256xf32>
    %15 = arith.subf %5, %14 : vector<256x256xf32>
    %16 = math.exp %15 : vector<256x256xf32>
    %cst_9 = arith.constant dense<0.000000e+00> : vector<256xf32>
    %17 = vector.multi_reduction <add>, %16, %cst_9 [1] : vector<256x256xf32> to vector<256xf32>
    %18 = vector.shape_cast %17 : vector<256xf32> to vector<256x1xf32>
    %19 = arith.addf %13, %18 : vector<256x1xf32>
    %c0_10 = arith.constant 0 : index
    %c0_11 = arith.constant 0 : index
    %20 = vector.load %arg6[%c0_10, %c0_11] : memref<256x1xf32, #tpu.memory_space<vmem>>, vector<256x1xf32>
    tpu.vector_store %arg6[%c0_10, %c0_11], %19 {strides = array<i32>} : memref<256x1xf32, #tpu.memory_space<vmem>>, vector<256x1xf32>,
    %c0_12 = arith.constant 0 : index
    %c0_13 = arith.constant 0 : index
    %21 = vector.load %arg5[%c0_12, %c0_13] : memref<256x1xf32, #tpu.memory_space<vmem>>, vector<256x1xf32>
    tpu.vector_store %arg5[%c0_12, %c0_13], %9 {strides = array<i32>} : memref<256x1xf32, #tpu.memory_space<vmem>>, vector<256x1xf32>,
    %c0_i32_14 = arith.constant 0 : i32
    %22 = arith.cmpi eq, %arg1, %c0_i32_14 : i32
    %23 = arith.extui %22 : i1 to i32
    %c0_i32_15 = arith.constant 0 : i32
    %24 = arith.cmpi ne, %23, %c0_i32_15 : i32
    scf.if %24 {
      %c0_16 = arith.constant 0 : index
      %c0_17 = arith.constant 0 : index
      %25 = vector.load %arg5[%c0_16, %c0_17] : memref<256x1xf32, #tpu.memory_space<vmem>>, vector<256x1xf32>
      %c0_18 = arith.constant 0 : index
      %c0_19 = arith.constant 0 : index
      %26 = vector.load %arg6[%c0_18, %c0_19] : memref<256x1xf32, #tpu.memory_space<vmem>>, vector<256x1xf32>
      %27 = math.log %26 : vector<256x1xf32>
      %28 = arith.addf %25, %27 : vector<256x1xf32>
      %c0_20 = arith.constant 0 : index
      %c0_21 = arith.constant 0 : index
      %29 = vector.load %arg4[%c0_20, %c0_21] : memref<256x1xf32, #tpu.memory_space<vmem>>, vector<256x1xf32>
      tpu.vector_store %arg4[%c0_20, %c0_21], %28 {strides = array<i32>} : memref<256x1xf32, #tpu.memory_space<vmem>>, vector<256x1xf32>,
    } else {
    }
    return
  }
  func.func @transform_0(%arg0: i32, %arg1: i32) -> (i32, i32) {
    %c0_i32 = arith.constant 0 : i32
    %c0_i32_0 = arith.constant 0 : i32
    return %arg0, %c0_i32 : i32, i32
  }
  func.func @transform_1(%arg0: i32, %arg1: i32) -> (i32, i32) {
    %c0_i32 = arith.constant 0 : i32
    %c0_i32_0 = arith.constant 0 : i32
    return %arg1, %c0_i32 : i32, i32
  }
  func.func @transform_2(%arg0: i32, %arg1: i32) -> (i32, i32) {
    %c0_i32 = arith.constant 0 : i32
    %c0_i32_0 = arith.constant 0 : i32
    return %arg0, %c0_i32 : i32, i32
  }
}

</mosaic_0001>

<bundles_post_ra>
// kernel: tpu_custom_call.1
= control target key start
LH: loop header
LB: loop body
LE: loop exit
PB: predicated region body
PF: predicated region fallthrough
CT: control target
= control target key end

     0   :  { %7 = vsyncpa [#allocation5], 0  ;;  %s3019_s0 = inlined_call_operand.hbm [shape: bf16[256,128], index: 0, kind: input, shape index: {}]   ;;  %s3020_s1 = inlined_call_operand.hbm [shape: bf16[256,128], index: 1, kind: input, shape index: {}]   ;;  %s3021_s2 = inlined_call_operand.vmem [shape: f32[256,1], index: 2, kind: output, shape index: {}]  }
   0x1   :  { %8 = vsyncpa [#allocation7], 0  ;;  %s2065_s9 = smov [#allocation4]   ;;  %s2017_s13 = scalar_lea.hbm %s3019_s0, 2048 }
   0x2   :  { %s14_s10 = sshll.u32 %s2065_s9, 4  ;;  %p2018_p0 = scmp.ne.s32.totalorder %s3019_s0, %s2017_s13  ;;  %s15_s10 = int_to_ptr.vmem [resolvable:$true] %s14_s10 }
   0x3   :  { %p2021_p1 = scmp.lt.u32.totalorder %s2017_s13, %s3019_s0 }
   0x5   :  { %p2023_p2 = pnand %p2021_p1, %p2018_p0 }
   0x7   :  { %2026 = shalt.err (!%p2023_p2)
}
   0x8   :  { %s2027_s18 = scalar_lea.vmem %s15_s10, 2048  ;;  %p2032_p4 = scmp.lt.s32.totalorder %s15_s10, %s15_s10 }
   0x9   :  { %p2028_p3 = scmp.ne.s32.totalorder %s15_s10, %s2027_s18  ;;  %p2033_p5 = scmp.lt.s32.totalorder %s2027_s18, %s2027_s18 }
   0xb   :  { %p2034_p6 = por %p2033_p5, %p2032_p4 }
   0xd   :  { %p2035_p7 = pnand %p2034_p6, %p2028_p3 }
   0xf   :  { %2038 = shalt.err (!%p2035_p7)
}
  0x10   :  { %s2066_s19 = smov 64   ;;  %s2067_s20 = smov 4  }
  0x11   :  { %20 = dma.hbm_to_vmem [thread:$0]  %s3019_s0, 2048, %s15_s10, [#allocation5], %s2066_s19, %s2066_s19, %s2067_s20  }
  0x12   :  { %s2068_s23 = smov [#allocation6]   ;;  %s2039_s27 = scalar_lea.hbm %s3020_s1, 2048 }
  0x13   :  { %s26_s24 = sshll.u32 %s2068_s23, 4  ;;  %p2040_p8 = scmp.ne.s32.totalorder %s3020_s1, %s2039_s27  ;;  %s27_s24 = int_to_ptr.vmem [resolvable:$true] %s26_s24 }
  0x14   :  { %p2043_p9 = scmp.lt.u32.totalorder %s2039_s27, %s3020_s1 }
  0x16   :  { %p2045_p10 = pnand %p2043_p9, %p2040_p8 }
  0x18   :  { %2048 = shalt.err (!%p2045_p10)
}
  0x19   :  { %s2049_s4 = scalar_lea.vmem %s27_s24, 2048  ;;  %p2054_p12 = scmp.lt.s32.totalorder %s27_s24, %s27_s24 }
  0x1a   :  { %p2050_p11 = scmp.ne.s32.totalorder %s27_s24, %s2049_s4  ;;  %p2055_p13 = scmp.lt.s32.totalorder %s2049_s4, %s2049_s4 }
  0x1c   :  { %p2056_p0 = por %p2055_p13, %p2054_p12 }
  0x1e   :  { %p2057_p1 = pnand %p2056_p0, %p2050_p11 }
  0x20   :  { %2060 = shalt.err (!%p2057_p1)
}
  0x21   :  { %32 = dma.hbm_to_vmem [thread:$0]  %s3020_s1, 2048, %s27_s24, [#allocation7], %s2066_s19, %s2066_s19, %s2067_s20  }
  0x22   :  { %2061 = dma.done.wait [#allocation5], 2048  }
  0x23   :  { %2062 = vsyncadd [#allocation5], 4294965248 }
  0x24   :  { %2063 = dma.done.wait [#allocation7], 2048  }
  0x25   :  { %2064 = vsyncadd [#allocation7], 4294965248  ;;  %v1729_v0 = vld [vmem:[#allocation6 + $0x40] sm:$0xff]   ;;  %v1731_v2 = vld [vmem:[#allocation6 + $0x48] sm:$0xff]   ;;  %vm44_vm0 = vcmask 7168   ;;  %v2069_v32 = vmov -inf  }
  0x26   :  { %v1730_v1 = vld [vmem:[#allocation6] sm:$0xff]   ;;  %1656 = vmatprep.subr.bf16.mxu0 %v1729_v0  ;;  %1704 = vmatprep.subr.bf16.mxu1 %v1729_v0  ;;  %v1732_v3 = vld [vmem:[#allocation6 + $0x8] sm:$0xff]   ;;  %v1733_v4 = vld [vmem:[#allocation6 + $0x50] sm:$0xff]   ;;  %45 = vst.msk [vmem:[#allocation2] sm:$0xff] %vm44_vm0, %v2069_v32 }
  0x27   :  { %1657 = vmatpush3.bf16.xpose.msra.mxu0 %v1730_v1  ;;  %1712 = vmatpush3.bf16.xpose.msra.mxu1 %v1730_v1  ;;  %v1734_v5 = vld [vmem:[#allocation6 + $0x10] sm:$0xff]   ;;  %v1735_v6 = vld [vmem:[#allocation6 + $0x58] sm:$0xff]   ;;  %v1745_v7 = vld [vmem:[#allocation4] sm:$0xff]   ;;  %46 = vst.msk [vmem:[#allocation2 + $0x8] sm:$0xff] %vm44_vm0, %v2069_v32 }
  0x28   :  { %1658 = vmatprep.subr.bf16.mxu0 %v1731_v2  ;;  %1705 = vmatprep.subr.bf16.mxu1 %v1731_v2  ;;  %v1746_v8 = vld [vmem:[#allocation4 + $0x40] sm:$0xff]   ;;  %v1736_v9 = vld [vmem:[#allocation6 + $0x18] sm:$0xff]   ;;  %v1739_v12 = vld [vmem:[#allocation6 + $0x68] sm:$0xff]   ;;  %47 = vst.msk [vmem:[#allocation2 + $0x10] sm:$0xff] %vm44_vm0, %v2069_v32 }
  0x29   :  { %1672 = vmatprep.mubr.bf16.mxu0 %v1745_v7  ;;  %1688 = vmatprep.mubr.bf16.mxu1 %v1746_v8  ;;  %v1737_v10 = vld [vmem:[#allocation6 + $0x60] sm:$0xff]   ;;  %v1740_v13 = vld [vmem:[#allocation6 + $0x28] sm:$0xff]   ;;  %v1741_v14 = vld [vmem:[#allocation6 + $0x70] sm:$0xff]   ;;  %48 = vst.msk [vmem:[#allocation2 + $0x18] sm:$0xff] %vm44_vm0, %v2069_v32 }
  0x2a   :  { %v1738_v11 = vld [vmem:[#allocation6 + $0x20] sm:$0xff]   ;;  %v1742_v15 = vld [vmem:[#allocation6 + $0x30] sm:$0xff]   ;;  %v1743_v16 = vld [vmem:[#allocation6 + $0x78] sm:$0xff]   ;;  %49 = vst.msk [vmem:[#allocation2 + $0x20] sm:$0xff] %vm44_vm0, %v2069_v32 }
  0x2b   :  { %v1744_v17 = vld [vmem:[#allocation6 + $0x38] sm:$0xff]   ;;  %v1747_v18 = vld [vmem:[#allocation4 + $0x8] sm:$0xff]   ;;  %v1749_v20 = vld [vmem:[#allocation4 + $0x10] sm:$0xff]   ;;  %50 = vst.msk [vmem:[#allocation2 + $0x28] sm:$0xff] %vm44_vm0, %v2069_v32 }
  0x2c   :  { %v1748_v19 = vld [vmem:[#allocation4 + $0x48] sm:$0xff]   ;;  %v1750_v21 = vld [vmem:[#allocation4 + $0x50] sm:$0xff]   ;;  %v1751_v22 = vld [vmem:[#allocation4 + $0x18] sm:$0xff]   ;;  %51 = vst.msk [vmem:[#allocation2 + $0x30] sm:$0xff] %vm44_vm0, %v2069_v32 }
  0x2d   :  { %v1752_v23 = vld [vmem:[#allocation4 + $0x58] sm:$0xff]   ;;  %v1753_v24 = vld [vmem:[#allocation4 + $0x20] sm:$0xff]   ;;  %v1755_v26 = vld [vmem:[#allocation4 + $0x28] sm:$0xff]   ;;  %52 = vst.msk [vmem:[#allocation2 + $0x38] sm:$0xff] %vm44_vm0, %v2069_v32 }
  0x2e   :  { %v1754_v25 = vld [vmem:[#allocation4 + $0x60] sm:$0xff]   ;;  %v1756_v27 = vld [vmem:[#allocation4 + $0x68] sm:$0xff]   ;;  %v1757_v28 = vld [vmem:[#allocation4 + $0x30] sm:$0xff]   ;;  %53 = vst.msk [vmem:[#allocation2 + $0x40] sm:$0xff] %vm44_vm0, %v2069_v32 }
  0x2f   :  { %1659 = vmatpush3.bf16.xpose.msra.mxu0 %v1732_v3  ;;  %1713 = vmatpush3.bf16.xpose.msra.mxu1 %v1732_v3  ;;  %v1758_v29 = vld [vmem:[#allocation4 + $0x70] sm:$0xff]   ;;  %v1759_v30 = vld [vmem:[#allocation4 + $0x38] sm:$0xff]   ;;  %54 = vst.msk [vmem:[#allocation2 + $0x48] sm:$0xff] %vm44_vm0, %v2069_v32  ;;  %55 = vst.msk [vmem:[#allocation2 + $0x50] sm:$0xff] %vm44_vm0, %v2069_v32  ;;  %v2070_v3 = vmov 0  }
  0x30   :  { %1660 = vmatprep.subr.bf16.mxu0 %v1733_v4  ;;  %1706 = vmatprep.subr.bf16.mxu1 %v1733_v4  ;;  %v1760_v31 = vld [vmem:[#allocation4 + $0x78] sm:$0xff]   ;;  %56 = vst.msk [vmem:[#allocation2 + $0x58] sm:$0xff] %vm44_vm0, %v2069_v32  ;;  %57 = vst.msk [vmem:[#allocation2 + $0x60] sm:$0xff] %vm44_vm0, %v2069_v32 }
  0x31   :  { %58 = vst.msk [vmem:[#allocation2 + $0x68] sm:$0xff] %vm44_vm0, %v2069_v32  ;;  %59 = vst.msk [vmem:[#allocation2 + $0x70] sm:$0xff] %vm44_vm0, %v2069_v32  ;;  %1727 = vset.pattern.permute.xlu0 %v2070_v3  ;;  %1728 = vset.pattern.permute.xlu1 %v2070_v3 }
  0x32   :  { %60 = vst.msk [vmem:[#allocation2 + $0x78] sm:$0xff] %vm44_vm0, %v2069_v32  ;;  %61 = vst.msk [vmem:[#allocation2 + $0x80] sm:$0xff] %vm44_vm0, %v2069_v32 }
  0x33   :  { %62 = vst.msk [vmem:[#allocation2 + $0x88] sm:$0xff] %vm44_vm0, %v2069_v32  ;;  %63 = vst.msk [vmem:[#allocation2 + $0x90] sm:$0xff] %vm44_vm0, %v2069_v32 }
  0x34   :  { %64 = vst.msk [vmem:[#allocation2 + $0x98] sm:$0xff] %vm44_vm0, %v2069_v32  ;;  %65 = vst.msk [vmem:[#allocation2 + $0xa0] sm:$0xff] %vm44_vm0, %v2069_v32 }
  0x35   :  { %66 = vst.msk [vmem:[#allocation2 + $0xa8] sm:$0xff] %vm44_vm0, %v2069_v32  ;;  %67 = vst.msk [vmem:[#allocation2 + $0xb0] sm:$0xff] %vm44_vm0, %v2069_v32 }
  0x36   :  { %68 = vst.msk [vmem:[#allocation2 + $0xb8] sm:$0xff] %vm44_vm0, %v2069_v32  ;;  %69 = vst.msk [vmem:[#allocation2 + $0xc0] sm:$0xff] %vm44_vm0, %v2069_v32 }
  0x37   :  { %1661 = vmatpush3.bf16.xpose.msra.mxu0 %v1734_v5  ;;  %1714 = vmatpush3.bf16.xpose.msra.mxu1 %v1734_v5  ;;  %70 = vst.msk [vmem:[#allocation2 + $0xc8] sm:$0xff] %vm44_vm0, %v2069_v32  ;;  %71 = vst.msk [vmem:[#allocation2 + $0xd0] sm:$0xff] %vm44_vm0, %v2069_v32 }
  0x38   :  { %1662 = vmatprep.subr.bf16.mxu0 %v1735_v6  ;;  %1707 = vmatprep.subr.bf16.mxu1 %v1735_v6  ;;  %72 = vst.msk [vmem:[#allocation2 + $0xd8] sm:$0xff] %vm44_vm0, %v2069_v32  ;;  %73 = vst.msk [vmem:[#allocation2 + $0xe0] sm:$0xff] %vm44_vm0, %v2069_v32 }
  0x39   :  { %74 = vst.msk [vmem:[#allocation2 + $0xe8] sm:$0xff] %vm44_vm0, %v2069_v32  ;;  %75 = vst.msk [vmem:[#allocation2 + $0xf0] sm:$0xff] %vm44_vm0, %v2069_v32 }
  0x3a   :  { %76 = vst.msk [vmem:[#allocation2 + $0xf8] sm:$0xff] %vm44_vm0, %v2069_v32 }
  0x3f   :  { %1663 = vmatpush3.bf16.xpose.msra.mxu0 %v1736_v9  ;;  %1715 = vmatpush3.bf16.xpose.msra.mxu1 %v1736_v9 }
  0x40   :  { %1664 = vmatprep.subr.bf16.mxu0 %v1737_v10  ;;  %1708 = vmatprep.subr.bf16.mxu1 %v1737_v10 }
  0x47   :  { %1665 = vmatpush3.bf16.xpose.msra.mxu0 %v1738_v11  ;;  %1716 = vmatpush3.bf16.xpose.msra.mxu1 %v1738_v11 }
  0x48   :  { %1666 = vmatprep.subr.bf16.mxu0 %v1739_v12  ;;  %1709 = vmatprep.subr.bf16.mxu1 %v1739_v12 }
  0x4f   :  { %1667 = vmatpush3.bf16.xpose.msra.mxu0 %v1740_v13  ;;  %1717 = vmatpush3.bf16.xpose.msra.mxu1 %v1740_v13 }
  0x50   :  { %1668 = vmatprep.subr.bf16.mxu0 %v1741_v14  ;;  %1710 = vmatprep.subr.bf16.mxu1 %v1741_v14 }
  0x57   :  { %1669 = vmatpush3.bf16.xpose.msra.mxu0 %v1742_v15  ;;  %1718 = vmatpush3.bf16.xpose.msra.mxu1 %v1742_v15 }
  0x58   :  { %1670 = vmatprep.subr.bf16.mxu0 %v1743_v16  ;;  %1711 = vmatprep.subr.bf16.mxu1 %v1743_v16 }
  0x5f   :  { %1671 = vmatpush3.bf16.xpose.msra.mxu0 %v1744_v17  ;;  %1719 = vmatpush3.bf16.xpose.msra.mxu1 %v1744_v17 }
  0x66   :  { %1673 = vmatmul.mubr.bf16.vlgmr.msra.gmra.mrb[0].mxu0 %v1745_v7  ;;  %1689 = vmatmul.mubr.bf16.vlgmr.msra.gmra.mrb[0].mxu1 %v1746_v8 }
  0x67   :  { %1674 = vmatprep.mubr.bf16.mxu0 %v1747_v18  ;;  %1690 = vmatprep.mubr.bf16.mxu1 %v1748_v19 }
  0x6e   :  { %1675 = vmatmul.mubr.bf16.gmra.mrb[4].mxu0 %v1747_v18  ;;  %1691 = vmatmul.mubr.bf16.gmra.mrb[4].mxu1 %v1748_v19  ;;  %v2071_v18 = vmov 0.0  }
  0x6f   :  { %1676 = vmatprep.mubr.bf16.mxu0 %v1749_v20  ;;  %1692 = vmatprep.mubr.bf16.mxu1 %v1750_v21  ;;  %77 = vst.msk [vmem:[#allocation3] sm:$0xff] %vm44_vm0, %v2071_v18  ;;  %78 = vst.msk [vmem:[#allocation3 + $0x8] sm:$0xff] %vm44_vm0, %v2071_v18 }
  0x70   :  { %79 = vst.msk [vmem:[#allocation3 + $0x10] sm:$0xff] %vm44_vm0, %v2071_v18  ;;  %80 = vst.msk [vmem:[#allocation3 + $0x18] sm:$0xff] %vm44_vm0, %v2071_v18 }
  0x71   :  { %81 = vst.msk [vmem:[#allocation3 + $0x20] sm:$0xff] %vm44_vm0, %v2071_v18  ;;  %82 = vst.msk [vmem:[#allocation3 + $0x28] sm:$0xff] %vm44_vm0, %v2071_v18 }
  0x72   :  { %83 = vst.msk [vmem:[#allocation3 + $0x30] sm:$0xff] %vm44_vm0, %v2071_v18  ;;  %84 = vst.msk [vmem:[#allocation3 + $0x38] sm:$0xff] %vm44_vm0, %v2071_v18 }
  0x73   :  { %85 = vst.msk [vmem:[#allocation3 + $0x40] sm:$0xff] %vm44_vm0, %v2071_v18  ;;  %86 = vst.msk [vmem:[#allocation3 + $0x48] sm:$0xff] %vm44_vm0, %v2071_v18 }
  0x74   :  { %87 = vst.msk [vmem:[#allocation3 + $0x50] sm:$0xff] %vm44_vm0, %v2071_v18  ;;  %88 = vst.msk [vmem:[#allocation3 + $0x58] sm:$0xff] %vm44_vm0, %v2071_v18 }
  0x75   :  { %89 = vst.msk [vmem:[#allocation3 + $0x60] sm:$0xff] %vm44_vm0, %v2071_v18  ;;  %90 = vst.msk [vmem:[#allocation3 + $0x68] sm:$0xff] %vm44_vm0, %v2071_v18 }
  0x76   :  { %1677 = vmatmul.mubr.bf16.gmra.mrb[8].mxu0 %v1749_v20  ;;  %1693 = vmatmul.mubr.bf16.gmra.mrb[8].mxu1 %v1750_v21  ;;  %91 = vst.msk [vmem:[#allocation3 + $0x70] sm:$0xff] %vm44_vm0, %v2071_v18  ;;  %92 = vst.msk [vmem:[#allocation3 + $0x78] sm:$0xff] %vm44_vm0, %v2071_v18 }
  0x77   :  { %1678 = vmatprep.mubr.bf16.mxu0 %v1751_v22  ;;  %1694 = vmatprep.mubr.bf16.mxu1 %v1752_v23  ;;  %93 = vst.msk [vmem:[#allocation3 + $0x80] sm:$0xff] %vm44_vm0, %v2071_v18  ;;  %94 = vst.msk [vmem:[#allocation3 + $0x88] sm:$0xff] %vm44_vm0, %v2071_v18 }
  0x78   :  { %95 = vst.msk [vmem:[#allocation3 + $0x90] sm:$0xff] %vm44_vm0, %v2071_v18  ;;  %96 = vst.msk [vmem:[#allocation3 + $0x98] sm:$0xff] %vm44_vm0, %v2071_v18 }
  0x79   :  { %97 = vst.msk [vmem:[#allocation3 + $0xa0] sm:$0xff] %vm44_vm0, %v2071_v18  ;;  %98 = vst.msk [vmem:[#allocation3 + $0xa8] sm:$0xff] %vm44_vm0, %v2071_v18 }
  0x7a   :  { %99 = vst.msk [vmem:[#allocation3 + $0xb0] sm:$0xff] %vm44_vm0, %v2071_v18  ;;  %100 = vst.msk [vmem:[#allocation3 + $0xb8] sm:$0xff] %vm44_vm0, %v2071_v18 }
  0x7b   :  { %101 = vst.msk [vmem:[#allocation3 + $0xc0] sm:$0xff] %vm44_vm0, %v2071_v18  ;;  %102 = vst.msk [vmem:[#allocation3 + $0xc8] sm:$0xff] %vm44_vm0, %v2071_v18 }
  0x7c   :  { %103 = vst.msk [vmem:[#allocation3 + $0xd0] sm:$0xff] %vm44_vm0, %v2071_v18  ;;  %104 = vst.msk [vmem:[#allocation3 + $0xd8] sm:$0xff] %vm44_vm0, %v2071_v18 }
  0x7d   :  { %105 = vst.msk [vmem:[#allocation3 + $0xe0] sm:$0xff] %vm44_vm0, %v2071_v18  ;;  %106 = vst.msk [vmem:[#allocation3 + $0xe8] sm:$0xff] %vm44_vm0, %v2071_v18 }
  0x7e   :  { %1679 = vmatmul.mubr.bf16.gmra.mrb[12].mxu0 %v1751_v22  ;;  %1695 = vmatmul.mubr.bf16.gmra.mrb[12].mxu1 %v1752_v23  ;;  %107 = vst.msk [vmem:[#allocation3 + $0xf0] sm:$0xff] %vm44_vm0, %v2071_v18  ;;  %108 = vst.msk [vmem:[#allocation3 + $0xf8] sm:$0xff] %vm44_vm0, %v2071_v18 }
  0x7f   :  { %1680 = vmatprep.mubr.bf16.mxu0 %v1753_v24  ;;  %1696 = vmatprep.mubr.bf16.mxu1 %v1754_v25 }
  0x86   :  { %1681 = vmatmul.mubr.bf16.gmra.mrb[16].mxu0 %v1753_v24  ;;  %1697 = vmatmul.mubr.bf16.gmra.mrb[16].mxu1 %v1754_v25 }
  0x87   :  { %1682 = vmatprep.mubr.bf16.mxu0 %v1755_v26  ;;  %1698 = vmatprep.mubr.bf16.mxu1 %v1756_v27 }
  0x8e   :  { %1683 = vmatmul.mubr.bf16.gmra.mrb[20].mxu0 %v1755_v26  ;;  %1699 = vmatmul.mubr.bf16.gmra.mrb[20].mxu1 %v1756_v27 }
  0x8f   :  { %1684 = vmatprep.mubr.bf16.mxu0 %v1757_v28  ;;  %1700 = vmatprep.mubr.bf16.mxu1 %v1758_v29 }
  0x96   :  { %1685 = vmatmul.mubr.bf16.gmra.mrb[24].mxu0 %v1757_v28  ;;  %1701 = vmatmul.mubr.bf16.gmra.mrb[24].mxu1 %v1758_v29 }
  0x97   :  { %1686 = vmatprep.mubr.bf16.mxu0 %v1759_v30  ;;  %1702 = vmatprep.mubr.bf16.mxu1 %v1760_v31 }
  0x9e   :  { %1687 = vmatmul.mubr.bf16.gmra.mrb[28].mxu0 %v1759_v30  ;;  %1703 = vmatmul.mubr.bf16.gmra.mrb[28].mxu1 %v1760_v31 }
 0x139   :  { %v2143_v33 = vpop.f32.mrb[0].mxu0  ;;  %v2145_v34 = vpop.f32.mrb[0].mxu1 }
 0x13a   :  { %v2147_v35 = vpop.f32.mrb[1].mxu0  ;;  %v2149_v36 = vpop.f32.mrb[1].mxu1 }
 0x13b   :  { %v2151_v37 = vpop.f32.mrb[2].mxu0  ;;  %v2153_v38 = vpop.f32.mrb[2].mxu1  ;;  %v590_v39 = vmax.f32 %v2143_v33, %v2147_v35  ;;  %v638_v40 = vmax.f32 %v2145_v34, %v2149_v36 }
 0x13c   :  { %v2159_v41 = vpop.f32.mrb[3].mxu0  ;;  %v2161_v42 = vpop.f32.mrb[3].mxu1 }
 0x13d   :  { %591 = vmax.xlane.f32.xlu0 %v590_v39  ;;  %v641_v43 = vmax.f32 %v2153_v38, %v2161_v42  ;;  %v593_v44 = vmax.f32 %v2151_v37, %v2159_v41 }
 0x13f   :  { %642 = vmax.xlane.f32.xlu1 %v641_v43 }
 0x141   :  { %639 = vmax.xlane.f32.xlu0 %v638_v40  ;;  %v2167_v45 = vpop.f32.mrb[4].mxu0  ;;  %v2169_v46 = vpop.f32.mrb[4].mxu1 }
 0x142   :  { %v2171_v47 = vpop.f32.mrb[5].mxu0  ;;  %v2173_v48 = vpop.f32.mrb[5].mxu1 }
 0x143   :  { %v2175_v49 = vpop.f32.mrb[6].mxu0  ;;  %v596_v50 = vmax.f32 %v2167_v45, %v2171_v47  ;;  %v2179_v51 = vpop.f32.mrb[6].mxu1  ;;  %v644_v52 = vmax.f32 %v2169_v46, %v2173_v48 }
 0x144   :  { %v2183_v53 = vpop.f32.mrb[7].mxu0  ;;  %v2185_v54 = vpop.f32.mrb[7].mxu1 }
 0x145   :  { %594 = vmax.xlane.f32.xlu0 %v593_v44  ;;  %597 = vmax.xlane.f32.xlu1 %v596_v50  ;;  %v599_v55 = vmax.f32 %v2175_v49, %v2183_v53  ;;  %v647_v56 = vmax.f32 %v2179_v51, %v2185_v54 }
 0x149   :  { %600 = vmax.xlane.f32.xlu1 %v599_v55  ;;  %v2191_v57 = vpop.f32.mrb[8].mxu0  ;;  %645 = vmax.xlane.f32.xlu0 %v644_v52  ;;  %v2193_v58 = vpop.f32.mrb[8].mxu1 }
 0x14a   :  { %v2195_v59 = vpop.f32.mrb[9].mxu0  ;;  %v2197_v60 = vpop.f32.mrb[9].mxu1 }
 0x14b   :  { %v2199_v61 = vpop.f32.mrb[10].mxu0  ;;  %v2201_v62 = vpop.f32.mrb[10].mxu1  ;;  %v602_v63 = vmax.f32 %v2191_v57, %v2195_v59  ;;  %v650_v0 = vmax.f32 %v2193_v58, %v2197_v60 }
 0x14c   :  { %v2207_v1 = vpop.f32.mrb[11].mxu0  ;;  %v2209_v2 = vpop.f32.mrb[11].mxu1 }
 0x14d   :  { %648 = vmax.xlane.f32.xlu1 %v647_v56  ;;  %v605_v4 = vmax.f32 %v2199_v61, %v2207_v1  ;;  %603 = vmax.xlane.f32.xlu0 %v602_v63  ;;  %v653_v5 = vmax.f32 %v2201_v62, %v2209_v2 }
 0x151   :  { %606 = vmax.xlane.f32.xlu1 %v605_v4  ;;  %v2215_v6 = vpop.f32.mrb[12].mxu0  ;;  %v2217_v7 = vpop.f32.mrb[12].mxu1  ;;  %651 = vmax.xlane.f32.xlu0 %v650_v0 }
 0x152   :  { %v2219_v8 = vpop.f32.mrb[13].mxu0  ;;  %v2221_v9 = vpop.f32.mrb[13].mxu1 }
 0x153   :  { %v2223_v10 = vpop.f32.mrb[14].mxu0  ;;  %v2225_v11 = vpop.f32.mrb[14].mxu1  ;;  %v608_v12 = vmax.f32 %v2215_v6, %v2219_v8  ;;  %v656_v13 = vmax.f32 %v2217_v7, %v2221_v9 }
 0x154   :  { %v2231_v14 = vpop.f32.mrb[15].mxu0  ;;  %v2233_v15 = vpop.f32.mrb[15].mxu1 }
 0x155   :  { %654 = vmax.xlane.f32.xlu1 %v653_v5  ;;  %v611_v16 = vmax.f32 %v2223_v10, %v2231_v14  ;;  %v659_v17 = vmax.f32 %v2225_v11, %v2233_v15  ;;  %609 = vmax.xlane.f32.xlu0 %v608_v12 }
 0x159   :  { %612 = vmax.xlane.f32.xlu1 %v611_v16  ;;  %v2271_v19 = vpop.f32.mrb[16].mxu0  ;;  %v2273_v20 = vpop.f32.mrb[16].mxu1  ;;  %657 = vmax.xlane.f32.xlu0 %v656_v13 }
 0x15a   :  { %v2275_v21 = vpop.f32.mrb[17].mxu0  ;;  %v2277_v22 = vpop.f32.mrb[17].mxu1 }
 0x15b   :  { %v2279_v23 = vpop.f32.mrb[18].mxu0  ;;  %v2281_v24 = vpop.f32.mrb[18].mxu1  ;;  %v614_v25 = vmax.f32 %v2271_v19, %v2275_v21  ;;  %v662_v26 = vmax.f32 %v2273_v20, %v2277_v22 }
 0x15c   :  { %v2287_v27 = vpop.f32.mrb[19].mxu0  ;;  %v2289_v28 = vpop.f32.mrb[19].mxu1 }
 0x15d   :  { %660 = vmax.xlane.f32.xlu1 %v659_v17  ;;  %v617_v29 = vmax.f32 %v2279_v23, %v2287_v27  ;;  %v665_v30 = vmax.f32 %v2281_v24, %v2289_v28  ;;  %615 = vmax.xlane.f32.xlu0 %v614_v25 }
 0x161   :  { %618 = vmax.xlane.f32.xlu1 %v617_v29  ;;  %v2295_v31 = vpop.f32.mrb[20].mxu0  ;;  %v2297_v32 = vpop.f32.mrb[20].mxu1  ;;  %663 = vmax.xlane.f32.xlu0 %v662_v26 }
 0x162   :  { %3101 = vst [vmem:[#allocation10_spill] sm:$0xff] %v2297_v32  ;;  %v2299_v39 = vpop.f32.mrb[21].mxu0  ;;  %v2301_v40 = vpop.f32.mrb[21].mxu1 }
 0x163   :  { %3102 = vst [vmem:[#allocation11_spill] sm:$0xff] %v2301_v40  ;;  %v2303_v43 = vpop.f32.mrb[22].mxu0  ;;  %v2305_v44 = vpop.f32.mrb[22].mxu1  ;;  %v620_v50 = vmax.f32 %v2295_v31, %v2299_v39  ;;  %v668_v52 = vmax.f32 %v2297_v32, %v2301_v40  ;;  %v2367_v32 = vld [vmem:[#allocation2] sm:$0xff] }
 0x164   :  { %v2311_v55 = vpop.f32.mrb[23].mxu0  ;;  %v2313_v56 = vpop.f32.mrb[23].mxu1  ;;  %3117 = vst [vmem:[#allocation26_spill] sm:$0xff] %v2367_v32 }
 0x165   :  { %666 = vmax.xlane.f32.xlu1 %v665_v30  ;;  %v623_v63 = vmax.f32 %v2303_v43, %v2311_v55  ;;  %v671_v0 = vmax.f32 %v2305_v44, %v2313_v56  ;;  %621 = vmax.xlane.f32.xlu0 %v620_v50 }
 0x169   :  { %624 = vmax.xlane.f32.xlu1 %v623_v63  ;;  %v2319_v3 = vpop.f32.mrb[24].mxu0  ;;  %v2321_v4 = vpop.f32.mrb[24].mxu1  ;;  %669 = vmax.xlane.f32.xlu0 %v668_v52 }
 0x16a   :  { %3103 = vst [vmem:[#allocation12_spill] sm:$0xff] %v2319_v3  ;;  %3104 = vst [vmem:[#allocation13_spill] sm:$0xff] %v2321_v4  ;;  %v2323_v5 = vpop.f32.mrb[25].mxu0  ;;  %v2325_v12 = vpop.f32.mrb[25].mxu1 }
 0x16b   :  { %3105 = vst [vmem:[#allocation14_spill] sm:$0xff] %v2323_v5  ;;  %3106 = vst [vmem:[#allocation15_spill] sm:$0xff] %v2325_v12  ;;  %v2327_v13 = vpop.f32.mrb[26].mxu0  ;;  %v2329_v16 = vpop.f32.mrb[26].mxu1  ;;  %v626_v17 = vmax.f32 %v2319_v3, %v2323_v5  ;;  %v674_v18 = vmax.f32 %v2321_v4, %v2325_v12 }
 0x16c   :  { %3107 = vst [vmem:[#allocation16_spill] sm:$0xff] %v2329_v16  ;;  %v2335_v25 = vpop.f32.mrb[27].mxu0  ;;  %v2337_v26 = vpop.f32.mrb[27].mxu1 }
 0x16d   :  { %3108 = vst [vmem:[#allocation17_spill] sm:$0xff] %v2337_v26  ;;  %672 = vmax.xlane.f32.xlu1 %v671_v0  ;;  %v629_v29 = vmax.f32 %v2327_v13, %v2335_v25  ;;  %v677_v30 = vmax.f32 %v2329_v16, %v2337_v26  ;;  %627 = vmax.xlane.f32.xlu0 %v626_v17  ;;  %v2506_v26 = vld [vmem:[#allocation2 + $0x40] sm:$0xff]  ;;  %v2545_v16 = vld [vmem:[#allocation2 + $0x50] sm:$0xff] }
 0x16e   :  { %3148 = vst [vmem:[#allocation57_spill] sm:$0xff] %v2506_v26  ;;  %3155 = vst [vmem:[#allocation64_spill] sm:$0xff] %v2545_v16 }
 0x171   :  { %630 = vmax.xlane.f32.xlu1 %v629_v29  ;;  %v2343_v50 = vpop.f32.mrb[28].mxu0  ;;  %v2345_v52 = vpop.f32.mrb[28].mxu1  ;;  %675 = vmax.xlane.f32.xlu0 %v674_v18 }
 0x172   :  { %3109 = vst [vmem:[#allocation18_spill] sm:$0xff] %v2343_v50  ;;  %3110 = vst [vmem:[#allocation19_spill] sm:$0xff] %v2345_v52  ;;  %v2347_v63 = vpop.f32.mrb[29].mxu0  ;;  %v2349_v12 = vpop.f32.mrb[29].mxu1 }
 0x173   :  { %3111 = vst [vmem:[#allocation20_spill] sm:$0xff] %v2347_v63  ;;  %3112 = vst [vmem:[#allocation21_spill] sm:$0xff] %v2349_v12  ;;  %v2351_v4 = vpop.f32.mrb[30].mxu0  ;;  %v2353_v0 = vpop.f32.mrb[30].mxu1  ;;  %v632_v5 = vmax.f32 %v2343_v50, %v2347_v63  ;;  %v680_v17 = vmax.f32 %v2345_v52, %v2349_v12  ;;  %v2369_v50 = vld [vmem:[#allocation2 + $0x88] sm:$0xff] }
 0x174   :  { %3113 = vst [vmem:[#allocation22_spill] sm:$0xff] %v2351_v4  ;;  %3114 = vst [vmem:[#allocation23_spill] sm:$0xff] %v2353_v0  ;;  %v2359_v29 = vpop.f32.mrb[31].mxu0  ;;  %v2361_v3 = vpop.f32.mrb[31].mxu1 }
 0x175   :  { %3115 = vst [vmem:[#allocation24_spill] sm:$0xff] %v2359_v29  ;;  %3116 = vst [vmem:[#allocation25_spill] sm:$0xff] %v2361_v3  ;;  %678 = vmax.xlane.f32.xlu1 %v677_v30  ;;  %v635_v18 = vmax.f32 %v2351_v4, %v2359_v29  ;;  %v683_v40 = vmax.f32 %v2353_v0, %v2361_v3  ;;  %633 = vmax.xlane.f32.xlu0 %v632_v5  ;;  %v2374_v30 = vld [vmem:[#allocation2 + $0x80] sm:$0xff]  ;;  %v2393_v29 = vld [vmem:[#allocation2 + $0x10] sm:$0xff] }
 0x176   :  { %3118 = vst [vmem:[#allocation27_spill] sm:$0xff] %v2369_v50  ;;  %3120 = vst [vmem:[#allocation29_spill] sm:$0xff] %v2374_v30  ;;  %v2409_v3 = vld [vmem:[#allocation2 + $0x90] sm:$0xff] }
 0x177   :  { %3124 = vst [vmem:[#allocation33_spill] sm:$0xff] %v2393_v29  ;;  %3128 = vst [vmem:[#allocation37_spill] sm:$0xff] %v2409_v3  ;;  %v2467_v4 = vld [vmem:[#allocation2 + $0x30] sm:$0xff] }
 0x178   :  { %3140 = vst [vmem:[#allocation49_spill] sm:$0xff] %v2467_v4 }
 0x179   :  { %636 = vmax.xlane.f32.xlu1 %v635_v18  ;;  %681 = vmax.xlane.f32.xlu0 %v680_v17  ;;  %v2391_v18 = vld [vmem:[#allocation2 + $0x8] sm:$0xff] }
 0x17a   :  { %3123 = vst [vmem:[#allocation32_spill] sm:$0xff] %v2391_v18 }
 0x17d   :  { %684 = vmax.xlane.f32.xlu1 %v683_v40 }
 0x1ca   :  { %v592_v63 = vpop.xlane.xlu0 %591 }
 0x1cb   :  { %v2372_v12 = vmax.f32 %v2367_v32, %v592_v63  ;;  %v2407_v32 = vld [vmem:[#allocation2 + $0x18] sm:$0xff] }
 0x1cc   :  { %v643_v52 = vpop.xlane.xlu1 %642  ;;  %3127 = vst [vmem:[#allocation36_spill] sm:$0xff] %v2407_v32 }
 0x1cd   :  { %3119 = vst [vmem:[#allocation28_spill] sm:$0xff] %v2372_v12  ;;  %1391 = vst.msk [vmem:[#allocation2] sm:$0xff] %vm44_vm0, %v2372_v12  ;;  %v2381_v5 = vmax.f32 %v2369_v50, %v643_v52  ;;  %880 = vperm.xlu0 %1727, %v2372_v12   ;;  %v2426_v52 = vld [vmem:[#allocation2 + $0x98] sm:$0xff] }
 0x1ce   :  { %v640_v40 = vpop.xlane.xlu0 %639  ;;  %3131 = vst [vmem:[#allocation40_spill] sm:$0xff] %v2426_v52 }
 0x1cf   :  { %3121 = vst [vmem:[#allocation30_spill] sm:$0xff] %v2381_v5  ;;  %1408 = vst.msk [vmem:[#allocation2 + $0x88] sm:$0xff] %vm44_vm0, %v2381_v5  ;;  %v2389_v63 = vmax.f32 %v2374_v30, %v640_v40 }
 0x1d1   :  { %3122 = vst [vmem:[#allocation31_spill] sm:$0xff] %v2389_v63  ;;  %1407 = vst.msk [vmem:[#allocation2 + $0x80] sm:$0xff] %vm44_vm0, %v2389_v63  ;;  %960 = vperm.xlu1 %1728, %v2389_v63   ;;  %965 = vperm.xlu0 %1727, %v2381_v5   ;;  %v2445_v5 = vld [vmem:[#allocation2 + $0x28] sm:$0xff] }
 0x1d2   :  { %v595_v17 = vpop.xlane.xlu0 %594  ;;  %v598_v50 = vpop.xlane.xlu1 %597  ;;  %3135 = vst [vmem:[#allocation44_spill] sm:$0xff] %v2445_v5 }
 0x1d3   :  { %v2402_v12 = vmax.f32 %v2391_v18, %v595_v17  ;;  %v2405_v40 = vmax.f32 %v2393_v29, %v598_v50  ;;  %v2428_v18 = vld [vmem:[#allocation2 + $0x20] sm:$0xff] }
 0x1d4   :  { %3132 = vst [vmem:[#allocation41_spill] sm:$0xff] %v2428_v18 }
 0x1d5   :  { %3125 = vst [vmem:[#allocation34_spill] sm:$0xff] %v2402_v12  ;;  %3126 = vst [vmem:[#allocation35_spill] sm:$0xff] %v2405_v40  ;;  %885 = vperm.xlu1 %1728, %v2402_v12  }
 0x1d6   :  { %1392 = vst.msk [vmem:[#allocation2 + $0x8] sm:$0xff] %vm44_vm0, %v2402_v12  ;;  %1393 = vst.msk [vmem:[#allocation2 + $0x10] sm:$0xff] %vm44_vm0, %v2405_v40  ;;  %v601_v50 = vpop.xlane.xlu1 %600  ;;  %v646_v17 = vpop.xlane.xlu0 %645 }
 0x1d7   :  { %v2421_v63 = vmax.f32 %v2407_v32, %v601_v50  ;;  %v2424_v30 = vmax.f32 %v2409_v3, %v646_v17  ;;  %v2447_v32 = vld [vmem:[#allocation2 + $0xa0] sm:$0xff] }
 0x1d8   :  { %3136 = vst [vmem:[#allocation45_spill] sm:$0xff] %v2447_v32 }
 0x1d9   :  { %3129 = vst [vmem:[#allocation38_spill] sm:$0xff] %v2421_v63  ;;  %3130 = vst [vmem:[#allocation39_spill] sm:$0xff] %v2424_v30  ;;  %890 = vperm.xlu1 %1728, %v2405_v40  }
 0x1da   :  { %1394 = vst.msk [vmem:[#allocation2 + $0x18] sm:$0xff] %vm44_vm0, %v2421_v63  ;;  %1409 = vst.msk [vmem:[#allocation2 + $0x90] sm:$0xff] %vm44_vm0, %v2424_v30  ;;  %v649_v50 = vpop.xlane.xlu1 %648  ;;  %v604_v17 = vpop.xlane.xlu0 %603 }
 0x1db   :  { %v2440_v12 = vmax.f32 %v2426_v52, %v649_v50  ;;  %v2443_v0 = vmax.f32 %v2428_v18, %v604_v17  ;;  %v2465_v52 = vld [vmem:[#allocation2 + $0xa8] sm:$0xff] }
 0x1dc   :  { %3139 = vst [vmem:[#allocation48_spill] sm:$0xff] %v2465_v52 }
 0x1dd   :  { %3133 = vst [vmem:[#allocation42_spill] sm:$0xff] %v2440_v12  ;;  %3134 = vst [vmem:[#allocation43_spill] sm:$0xff] %v2443_v0  ;;  %970 = vperm.xlu1 %1728, %v2424_v30   ;;  %975 = vperm.xlu0 %1727, %v2440_v12  }
 0x1de   :  { %1410 = vst.msk [vmem:[#allocation2 + $0x98] sm:$0xff] %vm44_vm0, %v2440_v12  ;;  %1395 = vst.msk [vmem:[#allocation2 + $0x20] sm:$0xff] %vm44_vm0, %v2443_v0  ;;  %v607_v17 = vpop.xlane.xlu1 %606  ;;  %v652_v3 = vpop.xlane.xlu0 %651  ;;  %v2484_v12 = vld [vmem:[#allocation2 + $0x38] sm:$0xff] }
 0x1df   :  { %v2460_v40 = vmax.f32 %v2445_v5, %v607_v17  ;;  %v2463_v29 = vmax.f32 %v2447_v32, %v652_v3  ;;  %3143 = vst [vmem:[#allocation52_spill] sm:$0xff] %v2484_v12  ;;  %v2486_v5 = vld [vmem:[#allocation2 + $0xb0] sm:$0xff] }
 0x1e0   :  { %3144 = vst [vmem:[#allocation53_spill] sm:$0xff] %v2486_v5 }
 0x1e1   :  { %3137 = vst [vmem:[#allocation46_spill] sm:$0xff] %v2460_v40  ;;  %3138 = vst [vmem:[#allocation47_spill] sm:$0xff] %v2463_v29  ;;  %895 = vperm.xlu1 %1728, %v2421_v63  }
 0x1e2   :  { %1396 = vst.msk [vmem:[#allocation2 + $0x28] sm:$0xff] %vm44_vm0, %v2460_v40  ;;  %1411 = vst.msk [vmem:[#allocation2 + $0xa0] sm:$0xff] %vm44_vm0, %v2463_v29  ;;  %v655_v3 = vpop.xlane.xlu1 %654  ;;  %v610_v17 = vpop.xlane.xlu0 %609 }
 0x1e3   :  { %v2479_v18 = vmax.f32 %v2465_v52, %v655_v3  ;;  %v2482_v30 = vmax.f32 %v2467_v4, %v610_v17  ;;  %v2504_v52 = vld [vmem:[#allocation2 + $0xb8] sm:$0xff] }
 0x1e4   :  { %3147 = vst [vmem:[#allocation56_spill] sm:$0xff] %v2504_v52 }
 0x1e5   :  { %3141 = vst [vmem:[#allocation50_spill] sm:$0xff] %v2479_v18  ;;  %3142 = vst [vmem:[#allocation51_spill] sm:$0xff] %v2482_v30  ;;  %900 = vperm.xlu1 %1728, %v2443_v0   ;;  %985 = vperm.xlu0 %1727, %v2479_v18  }
 0x1e6   :  { %1412 = vst.msk [vmem:[#allocation2 + $0xa8] sm:$0xff] %vm44_vm0, %v2479_v18  ;;  %1397 = vst.msk [vmem:[#allocation2 + $0x30] sm:$0xff] %vm44_vm0, %v2482_v30  ;;  %v613_v17 = vpop.xlane.xlu1 %612  ;;  %v658_v50 = vpop.xlane.xlu0 %657  ;;  %v2523_v18 = vld [vmem:[#allocation2 + $0x48] sm:$0xff] }
 0x1e7   :  { %v2499_v32 = vmax.f32 %v2484_v12, %v613_v17  ;;  %v2502_v63 = vmax.f32 %v2486_v5, %v658_v50  ;;  %3151 = vst [vmem:[#allocation60_spill] sm:$0xff] %v2523_v18  ;;  %v2525_v12 = vld [vmem:[#allocation2 + $0xc0] sm:$0xff] }
 0x1e8   :  { %3152 = vst [vmem:[#allocation61_spill] sm:$0xff] %v2525_v12 }
 0x1e9   :  { %3145 = vst [vmem:[#allocation54_spill] sm:$0xff] %v2499_v32  ;;  %3146 = vst [vmem:[#allocation55_spill] sm:$0xff] %v2502_v63  ;;  %980 = vperm.xlu1 %1728, %v2463_v29  }
 0x1ea   :  { %1398 = vst.msk [vmem:[#allocation2 + $0x38] sm:$0xff] %vm44_vm0, %v2499_v32  ;;  %1413 = vst.msk [vmem:[#allocation2 + $0xb0] sm:$0xff] %vm44_vm0, %v2502_v63  ;;  %v661_v50 = vpop.xlane.xlu1 %660  ;;  %v616_v17 = vpop.xlane.xlu0 %615 }
 0x1eb   :  { %v2518_v4 = vmax.f32 %v2504_v52, %v661_v50  ;;  %v2521_v0 = vmax.f32 %v2506_v26, %v616_v17  ;;  %v2543_v52 = vld [vmem:[#allocation2 + $0xc8] sm:$0xff] }
 0x1ec   :  { %3154 = vst [vmem:[#allocation63_spill] sm:$0xff] %v2543_v52 }
 0x1ed   :  { %3149 = vst [vmem:[#allocation58_spill] sm:$0xff] %v2518_v4  ;;  %3150 = vst [vmem:[#allocation59_spill] sm:$0xff] %v2521_v0  ;;  %905 = vperm.xlu1 %1728, %v2460_v40   ;;  %995 = vperm.xlu0 %1727, %v2518_v4   ;;  %v2565_v40 = vld [vmem:[#allocation2 + $0xd0] sm:$0xff] }
 0x1ee   :  { %1414 = vst.msk [vmem:[#allocation2 + $0xb8] sm:$0xff] %vm44_vm0, %v2518_v4  ;;  %1399 = vst.msk [vmem:[#allocation2 + $0x40] sm:$0xff] %vm44_vm0, %v2521_v0  ;;  %v619_v17 = vpop.xlane.xlu1 %618  ;;  %v664_v3 = vpop.xlane.xlu0 %663 }
 0x1ef   :  { %v2538_v5 = vmax.f32 %v2523_v18, %v619_v17  ;;  %v2541_v29 = vmax.f32 %v2525_v12, %v664_v3  ;;  %v2563_v18 = vld [vmem:[#allocation2 + $0x58] sm:$0xff]  ;;  %3159 = vst [vmem:[#allocation68_spill] sm:$0xff] %v2565_v40 }
 0x1f0   :  { %3158 = vst [vmem:[#allocation67_spill] sm:$0xff] %v2563_v18 }
 0x1f1   :  { %3153 = vst [vmem:[#allocation62_spill] sm:$0xff] %v2538_v5  ;;  %1400 = vst.msk [vmem:[#allocation2 + $0x48] sm:$0xff] %vm44_vm0, %v2538_v5  ;;  %910 = vperm.xlu1 %1728, %v2482_v30   ;;  %925 = vperm.xlu0 %1727, %v2538_v5   ;;  %v2585_v30 = vld [vmem:[#allocation2 + $0x60] sm:$0xff] }
 0x1f2   :  { %1415 = vst.msk [vmem:[#allocation2 + $0xc0] sm:$0xff] %vm44_vm0, %v2541_v29  ;;  %v667_v3 = vpop.xlane.xlu1 %666  ;;  %v622_v50 = vpop.xlane.xlu0 %621  ;;  %3163 = vst [vmem:[#allocation72_spill] sm:$0xff] %v2585_v30 }
 0x1f3   :  { %v2558_v26 = vmax.f32 %v2543_v52, %v667_v3  ;;  %v2561_v4 = vmax.f32 %v2545_v16, %v622_v50  ;;  %v2583_v52 = vld [vmem:[#allocation2 + $0xd8] sm:$0xff] }
 0x1f4   :  { %3162 = vst [vmem:[#allocation71_spill] sm:$0xff] %v2583_v52 }
 0x1f5   :  { %3156 = vst [vmem:[#allocation65_spill] sm:$0xff] %v2558_v26  ;;  %3157 = vst [vmem:[#allocation66_spill] sm:$0xff] %v2561_v4  ;;  %990 = vperm.xlu1 %1728, %v2502_v63   ;;  %1005 = vperm.xlu0 %1727, %v2558_v26   ;;  %v2605_v63 = vld [vmem:[#allocation2 + $0xe0] sm:$0xff] }
 0x1f6   :  { %1416 = vst.msk [vmem:[#allocation2 + $0xc8] sm:$0xff] %vm44_vm0, %v2558_v26  ;;  %1401 = vst.msk [vmem:[#allocation2 + $0x50] sm:$0xff] %vm44_vm0, %v2561_v4  ;;  %v625_v50 = vpop.xlane.xlu1 %624  ;;  %v670_v17 = vpop.xlane.xlu0 %669 }
 0x1f7   :  { %v2578_v12 = vmax.f32 %v2563_v18, %v625_v50  ;;  %v2581_v5 = vmax.f32 %v2565_v40, %v670_v17  ;;  %v2603_v18 = vld [vmem:[#allocation2 + $0x68] sm:$0xff]  ;;  %3167 = vst [vmem:[#allocation76_spill] sm:$0xff] %v2605_v63 }
 0x1f8   :  { %3166 = vst [vmem:[#allocation75_spill] sm:$0xff] %v2603_v18 }
 0x1f9   :  { %3160 = vst [vmem:[#allocation69_spill] sm:$0xff] %v2578_v12  ;;  %3161 = vst [vmem:[#allocation70_spill] sm:$0xff] %v2581_v5  ;;  %915 = vperm.xlu1 %1728, %v2499_v32   ;;  %935 = vperm.xlu0 %1727, %v2578_v12   ;;  %v2625_v32 = vld [vmem:[#allocation2 + $0x70] sm:$0xff] }
 0x1fa   :  { %1402 = vst.msk [vmem:[#allocation2 + $0x58] sm:$0xff] %vm44_vm0, %v2578_v12  ;;  %1417 = vst.msk [vmem:[#allocation2 + $0xd0] sm:$0xff] %vm44_vm0, %v2581_v5  ;;  %v673_v17 = vpop.xlane.xlu1 %672  ;;  %v628_v3 = vpop.xlane.xlu0 %627 }
 0x1fb   :  { %v2598_v16 = vmax.f32 %v2583_v52, %v673_v17  ;;  %v2601_v26 = vmax.f32 %v2585_v30, %v628_v3  ;;  %v2623_v52 = vld [vmem:[#allocation2 + $0xe8] sm:$0xff]  ;;  %3171 = vst [vmem:[#allocation80_spill] sm:$0xff] %v2625_v32 }
 0x1fc   :  { %3170 = vst [vmem:[#allocation79_spill] sm:$0xff] %v2623_v52 }
 0x1fd   :  { %3164 = vst [vmem:[#allocation73_spill] sm:$0xff] %v2598_v16  ;;  %3165 = vst [vmem:[#allocation74_spill] sm:$0xff] %v2601_v26  ;;  %920 = vperm.xlu1 %1728, %v2521_v0   ;;  %1015 = vperm.xlu0 %1727, %v2598_v16   ;;  %v2645_v0 = vld [vmem:[#allocation2 + $0xf0] sm:$0xff] }
 0x1fe   :  { %1418 = vst.msk [vmem:[#allocation2 + $0xd8] sm:$0xff] %vm44_vm0, %v2598_v16  ;;  %1403 = vst.msk [vmem:[#allocation2 + $0x60] sm:$0xff] %vm44_vm0, %v2601_v26  ;;  %v631_v3 = vpop.xlane.xlu1 %630  ;;  %v676_v50 = vpop.xlane.xlu0 %675 }
 0x1ff   :  { %v2618_v40 = vmax.f32 %v2603_v18, %v631_v3  ;;  %v2621_v12 = vmax.f32 %v2605_v63, %v676_v50  ;;  %v2643_v18 = vld [vmem:[#allocation2 + $0x78] sm:$0xff]  ;;  %3175 = vst [vmem:[#allocation84_spill] sm:$0xff] %v2645_v0 }
 0x200   :  { %3174 = vst [vmem:[#allocation83_spill] sm:$0xff] %v2643_v18 }
 0x201   :  { %3168 = vst [vmem:[#allocation77_spill] sm:$0xff] %v2618_v40  ;;  %3169 = vst [vmem:[#allocation78_spill] sm:$0xff] %v2621_v12  ;;  %1000 = vperm.xlu1 %1728, %v2541_v29   ;;  %945 = vperm.xlu0 %1727, %v2618_v40  }
 0x202   :  { %1404 = vst.msk [vmem:[#allocation2 + $0x68] sm:$0xff] %vm44_vm0, %v2618_v40  ;;  %1419 = vst.msk [vmem:[#allocation2 + $0xe0] sm:$0xff] %vm44_vm0, %v2621_v12  ;;  %v679_v50 = vpop.xlane.xlu1 %678  ;;  %v634_v17 = vpop.xlane.xlu0 %633 }
 0x203   :  { %v2638_v30 = vmax.f32 %v2623_v52, %v679_v50  ;;  %v2641_v16 = vmax.f32 %v2625_v32, %v634_v17  ;;  %v2663_v52 = vld [vmem:[#allocation2 + $0xf8] sm:$0xff] }
 0x204   :  { %3178 = vst [vmem:[#allocation87_spill] sm:$0xff] %v2663_v52 }
 0x205   :  { %3172 = vst [vmem:[#allocation81_spill] sm:$0xff] %v2638_v30  ;;  %3173 = vst [vmem:[#allocation82_spill] sm:$0xff] %v2641_v16  ;;  %930 = vperm.xlu1 %1728, %v2561_v4   ;;  %1025 = vperm.xlu0 %1727, %v2638_v30  }
 0x206   :  { %1420 = vst.msk [vmem:[#allocation2 + $0xe8] sm:$0xff] %vm44_vm0, %v2638_v30  ;;  %1405 = vst.msk [vmem:[#allocation2 + $0x70] sm:$0xff] %vm44_vm0, %v2641_v16  ;;  %v637_v17 = vpop.xlane.xlu1 %636  ;;  %v682_v3 = vpop.xlane.xlu0 %681 }
 0x207   :  { %v2658_v63 = vmax.f32 %v2643_v18, %v637_v17  ;;  %v2661_v40 = vmax.f32 %v2645_v0, %v682_v3 }
 0x209   :  { %3176 = vst [vmem:[#allocation85_spill] sm:$0xff] %v2658_v63  ;;  %3177 = vst [vmem:[#allocation86_spill] sm:$0xff] %v2661_v40  ;;  %1010 = vperm.xlu1 %1728, %v2581_v5   ;;  %955 = vperm.xlu0 %1727, %v2658_v63  }
 0x20a   :  { %1406 = vst.msk [vmem:[#allocation2 + $0x78] sm:$0xff] %vm44_vm0, %v2658_v63  ;;  %1421 = vst.msk [vmem:[#allocation2 + $0xf0] sm:$0xff] %vm44_vm0, %v2661_v40  ;;  %v685_v3 = vpop.xlane.xlu1 %684 }
 0x20b   :  { %v2676_v17 = vmax.f32 %v2663_v52, %v685_v3 }
 0x20d   :  { %3179 = vst [vmem:[#allocation88_spill] sm:$0xff] %v2676_v17  ;;  %1422 = vst.msk [vmem:[#allocation2 + $0xf8] sm:$0xff] %vm44_vm0, %v2676_v17  ;;  %940 = vperm.xlu1 %1728, %v2601_v26   ;;  %1035 = vperm.xlu0 %1727, %v2676_v17  }
 0x211   :  { %1020 = vperm.xlu1 %1728, %v2621_v12  }
 0x215   :  { %950 = vperm.xlu1 %1728, %v2641_v16  }
 0x219   :  { %1030 = vperm.xlu1 %1728, %v2661_v40  }
 0x24c   :  { %v881_v50 = vpop.permute.xlu0 %880 }
 0x24d   :  { %v1038_v3 = vsub.f32 %v2143_v33, %v881_v50  ;;  %v1039_v0 = vsub.f32 %v2147_v35, %v881_v50 }
 0x24f   :  { %v1102_v63 = vmul.f32 1.442695, %v1038_v3  ;;  %v1104_v4 = vmul.f32 1.442695, %v1039_v0 }
 0x250   :  { %v961_v52 = vpop.permute.xlu1 %960  ;;  %v966_v18 = vpop.permute.xlu0 %965 }
 0x251   :  { %1761 = vpow2.f32 %v1102_v63  ;;  %v1070_v32 = vsub.f32 %v2145_v34, %v961_v52  ;;  %v1071_v17 = vsub.f32 %v2149_v36, %v961_v52  ;;  %v1072_v30 = vsub.f32 %v2153_v38, %v966_v18 }
 0x252   :  { %1763 = vpow2.f32 %v1104_v4  ;;  %v1073_v16 = vsub.f32 %v2161_v42, %v966_v18 }
 0x253   :  { %v1166_v40 = vmul.f32 1.442695, %v1070_v32  ;;  %v1168_v12 = vmul.f32 1.442695, %v1071_v17  ;;  %v1170_v26 = vmul.f32 1.442695, %v1072_v30 }
 0x254   :  { %v1172_v33 = vmul.f32 1.442695, %v1073_v16  ;;  %v886_v5 = vpop.permute.xlu1 %885 }
 0x255   :  { %1765 = vpow2.f32 %v1166_v40  ;;  %v1040_v35 = vsub.f32 %v2151_v37, %v886_v5  ;;  %v1041_v0 = vsub.f32 %v2159_v41, %v886_v5 }
 0x256   :  { %1767 = vpow2.f32 %v1168_v12 }
 0x257   :  { %1769 = vpow2.f32 %v1170_v26  ;;  %v1106_v34 = vmul.f32 1.442695, %v1040_v35  ;;  %v1108_v63 = vmul.f32 1.442695, %v1041_v0 }
 0x258   :  { %1771 = vpow2.f32 %v1172_v33  ;;  %v891_v36 = vpop.permute.xlu1 %890 }
 0x259   :  { %1773 = vpow2.f32 %v1106_v34  ;;  %v1042_v38 = vsub.f32 %v2167_v45, %v891_v36  ;;  %v1043_v42 = vsub.f32 %v2171_v47, %v891_v36 }
 0x25a   :  { %1775 = vpow2.f32 %v1108_v63 }
 0x25b   :  { %v1762_v32 = vpop.eup %1761  ;;  %v1110_v4 = vmul.f32 1.442695, %v1042_v38  ;;  %v1112_v16 = vmul.f32 1.442695, %v1043_v42 }
 0x25c   :  { %v1764_v30 = vpop.eup %1763  ;;  %v971_v18 = vpop.permute.xlu1 %970 }
 0x25d   :  { %v976_v37 = vpop.permute.xlu0 %975  ;;  %1777 = vpow2.f32 %v1110_v4  ;;  %v1074_v41 = vsub.f32 %v2169_v46, %v971_v18  ;;  %v1075_v12 = vsub.f32 %v2173_v48, %v971_v18  ;;  %v1230_v45 = vadd.f32 %v1764_v30, %v1762_v32 }
 0x25e   :  { %v1076_v26 = vsub.f32 %v2179_v51, %v976_v37  ;;  %1779 = vpow2.f32 %v1112_v16  ;;  %v1077_v5 = vsub.f32 %v2185_v54, %v976_v37 }
 0x25f   :  { %v1766_v52 = vpop.eup %1765  ;;  %v1174_v47 = vmul.f32 1.442695, %v1074_v41  ;;  %v1176_v40 = vmul.f32 1.442695, %v1075_v12  ;;  %1231 = vadd.xlane.f32.xlu1 %v1230_v45 }
 0x260   :  { %v1178_v50 = vmul.f32 1.442695, %v1076_v26  ;;  %v1768_v17 = vpop.eup %1767  ;;  %v1180_v3 = vmul.f32 1.442695, %v1077_v5  ;;  %v896_v33 = vpop.permute.xlu1 %895 }
 0x261   :  { %v1770_v35 = vpop.eup %1769  ;;  %1781 = vpow2.f32 %v1174_v47  ;;  %v1044_v46 = vsub.f32 %v2175_v49, %v896_v33  ;;  %v1045_v48 = vsub.f32 %v2183_v53, %v896_v33  ;;  %v1278_v0 = vadd.f32 %v1768_v17, %v1766_v52 }
 0x262   :  { %v1772_v51 = vpop.eup %1771  ;;  %1783 = vpow2.f32 %v1176_v40 }
 0x263   :  { %v1774_v34 = vpop.eup %1773  ;;  %1785 = vpow2.f32 %v1178_v50  ;;  %v1114_v54 = vmul.f32 1.442695, %v1044_v46  ;;  %v1116_v63 = vmul.f32 1.442695, %v1045_v48  ;;  %1279 = vadd.xlane.f32.xlu0 %v1278_v0  ;;  %v1281_v36 = vadd.f32 %v1772_v51, %v1770_v35 }
 0x264   :  { %v1776_v38 = vpop.eup %1775  ;;  %1787 = vpow2.f32 %v1180_v3  ;;  %v901_v42 = vpop.permute.xlu1 %900 }
 0x265   :  { %v986_v32 = vpop.permute.xlu0 %985  ;;  %1789 = vpow2.f32 %v1114_v54  ;;  %1282 = vadd.xlane.f32.xlu1 %v1281_v36  ;;  %v1046_v4 = vsub.f32 %v2191_v57, %v901_v42  ;;  %v1047_v49 = vsub.f32 %v2195_v59, %v901_v42  ;;  %v1233_v30 = vadd.f32 %v1776_v38, %v1774_v34 }
 0x266   :  { %v1080_v53 = vsub.f32 %v2201_v62, %v986_v32  ;;  %1791 = vpow2.f32 %v1116_v63  ;;  %v1081_v16 = vsub.f32 %v2209_v2, %v986_v32 }
 0x267   :  { %v1778_v18 = vpop.eup %1777  ;;  %v1118_v37 = vmul.f32 1.442695, %v1046_v4  ;;  %v1120_v41 = vmul.f32 1.442695, %v1047_v49  ;;  %1234 = vadd.xlane.f32.xlu0 %v1233_v30 }
 0x268   :  { %v1186_v12 = vmul.f32 1.442695, %v1080_v53  ;;  %v1780_v26 = vpop.eup %1779  ;;  %v1188_v5 = vmul.f32 1.442695, %v1081_v16  ;;  %v981_v45 = vpop.permute.xlu1 %980 }
 0x269   :  { %1793 = vpow2.f32 %v1118_v37  ;;  %v1078_v52 = vsub.f32 %v2193_v58, %v981_v45  ;;  %v1079_v57 = vsub.f32 %v2197_v60, %v981_v45  ;;  %v1236_v59 = vadd.f32 %v1780_v26, %v1778_v18 }
 0x26a   :  { %1795 = vpow2.f32 %v1120_v41 }
 0x26b   :  { %v1782_v62 = vpop.eup %1781  ;;  %1797 = vpow2.f32 %v1186_v12  ;;  %v1182_v47 = vmul.f32 1.442695, %v1078_v52  ;;  %v1184_v2 = vmul.f32 1.442695, %v1079_v57  ;;  %1237 = vadd.xlane.f32.xlu0 %v1236_v59 }
 0x26c   :  { %v1784_v40 = vpop.eup %1783  ;;  %1799 = vpow2.f32 %v1188_v5  ;;  %v906_v50 = vpop.permute.xlu1 %905 }
 0x26d   :  { %v996_v17 = vpop.permute.xlu0 %995  ;;  %v1786_v3 = vpop.eup %1785  ;;  %1801 = vpow2.f32 %v1182_v47  ;;  %v1048_v33 = vsub.f32 %v2199_v61, %v906_v50  ;;  %v1049_v35 = vsub.f32 %v2207_v1, %v906_v50  ;;  %v1284_v48 = vadd.f32 %v1784_v40, %v1782_v62 }
 0x26e   :  { %v1084_v58 = vsub.f32 %v2225_v11, %v996_v17  ;;  %v1788_v60 = vpop.eup %1787  ;;  %1803 = vpow2.f32 %v1184_v2  ;;  %v1085_v46 = vsub.f32 %v2233_v15, %v996_v17 }
 0x26f   :  { %v1790_v0 = vpop.eup %1789  ;;  %v1122_v51 = vmul.f32 1.442695, %v1048_v33  ;;  %v1124_v34 = vmul.f32 1.442695, %v1049_v35  ;;  %v1287_v63 = vadd.f32 %v1788_v60, %v1786_v3  ;;  %1285 = vadd.xlane.f32.xlu0 %v1284_v48 }
 0x270   :  { %v1194_v54 = vmul.f32 1.442695, %v1084_v58  ;;  %v1792_v36 = vpop.eup %1791  ;;  %v1196_v38 = vmul.f32 1.442695, %v1085_v46  ;;  %v911_v42 = vpop.permute.xlu1 %910 }
 0x271   :  { %v926_v32 = vpop.permute.xlu0 %925  ;;  %1805 = vpow2.f32 %v1122_v51  ;;  %v1050_v61 = vsub.f32 %v2215_v6, %v911_v42  ;;  %v1051_v1 = vsub.f32 %v2219_v8, %v911_v42  ;;  %v1239_v4 = vadd.f32 %v1792_v36, %v1790_v0 }
 0x272   :  { %v1056_v11 = vsub.f32 %v2279_v23, %v926_v32  ;;  %1807 = vpow2.f32 %v1124_v34  ;;  %v1057_v15 = vsub.f32 %v2287_v27, %v926_v32 }
 0x273   :  { %v1794_v49 = vpop.eup %1793  ;;  %1809 = vpow2.f32 %v1194_v54  ;;  %v1126_v53 = vmul.f32 1.442695, %v1050_v61  ;;  %v1128_v16 = vmul.f32 1.442695, %v1051_v1  ;;  %1240 = vadd.xlane.f32.xlu1 %v1239_v4 }
 0x274   :  { %v1138_v30 = vmul.f32 1.442695, %v1056_v11  ;;  %v1796_v18 = vpop.eup %1795  ;;  %1811 = vpow2.f32 %v1196_v38  ;;  %v1140_v37 = vmul.f32 1.442695, %v1057_v15  ;;  %v991_v41 = vpop.permute.xlu1 %990 }
 0x275   :  { %v1006_v12 = vpop.permute.xlu0 %1005  ;;  %v1798_v6 = vpop.eup %1797  ;;  %1813 = vpow2.f32 %v1126_v53  ;;  %v1082_v8 = vsub.f32 %v2217_v7, %v991_v41  ;;  %v1083_v23 = vsub.f32 %v2221_v9, %v991_v41  ;;  %v1242_v45 = vadd.f32 %v1796_v18, %v1794_v49 }
 0x276   :  { %v1088_v27 = vsub.f32 %v2281_v24, %v1006_v12  ;;  %v1800_v26 = vpop.eup %1799  ;;  %1815 = vpow2.f32 %v1128_v16  ;;  %v1089_v5 = vsub.f32 %v2289_v28, %v1006_v12 }
 0x277   :  { %v1802_v52 = vpop.eup %1801  ;;  %1817 = vpow2.f32 %v1138_v30  ;;  %v1190_v57 = vmul.f32 1.442695, %v1082_v8  ;;  %v1192_v59 = vmul.f32 1.442695, %v1083_v23  ;;  %1243 = vadd.xlane.f32.xlu0 %v1242_v45  ;;  %1288 = vadd.xlane.f32.xlu1 %v1287_v63  ;;  %v1293_v9 = vadd.f32 %v1800_v26, %v1798_v6  ;;  %v3181_v45 = vld [vmem:[#allocation17_spill] sm:$0xff] }
 0x278   :  { %v1202_v62 = vmul.f32 1.442695, %v1088_v27  ;;  %v1804_v47 = vpop.eup %1803  ;;  %1819 = vpow2.f32 %v1140_v37  ;;  %v1204_v2 = vmul.f32 1.442695, %v1089_v5  ;;  %v916_v7 = vpop.permute.xlu1 %915  ;;  %v3180_v27 = vld [vmem:[#allocation16_spill] sm:$0xff] }
 0x279   :  { %v936_v40 = vpop.permute.xlu0 %935  ;;  %1821 = vpow2.f32 %v1190_v57  ;;  %v1052_v24 = vsub.f32 %v2223_v10, %v916_v7  ;;  %v1053_v50 = vsub.f32 %v2231_v14, %v916_v7  ;;  %v1290_v3 = vadd.f32 %v1804_v47, %v1802_v52 }
 0x27a   :  { %v1060_v28 = vsub.f32 %v2303_v43, %v936_v40  ;;  %1823 = vpow2.f32 %v1192_v59  ;;  %v1061_v17 = vsub.f32 %v2311_v55, %v936_v40 }
 0x27b   :  { %v1806_v33 = vpop.eup %1805  ;;  %1825 = vpow2.f32 %v1202_v62  ;;  %v1130_v35 = vmul.f32 1.442695, %v1052_v24  ;;  %v1132_v58 = vmul.f32 1.442695, %v1053_v50  ;;  %1291 = vadd.xlane.f32.xlu0 %v1290_v3  ;;  %v3182_v50 = vld [vmem:[#allocation10_spill] sm:$0xff] }
 0x27c   :  { %v1146_v60 = vmul.f32 1.442695, %v1060_v28  ;;  %v1808_v46 = vpop.eup %1807  ;;  %1827 = vpow2.f32 %v1204_v2  ;;  %v1148_v48 = vmul.f32 1.442695, %v1061_v17  ;;  %v921_v0 = vpop.permute.xlu1 %920  ;;  %v3183_v17 = vld [vmem:[#allocation11_spill] sm:$0xff] }
 0x27d   :  { %v1016_v51 = vpop.permute.xlu0 %1015  ;;  %v1810_v10 = vpop.eup %1809  ;;  %1829 = vpow2.f32 %v1130_v35  ;;  %v1054_v14 = vsub.f32 %v2271_v19, %v921_v0  ;;  %v1055_v43 = vsub.f32 %v2275_v21, %v921_v0  ;;  %v1245_v63 = vadd.f32 %v1808_v46, %v1806_v33  ;;  %v3184_v33 = vld [vmem:[#allocation22_spill] sm:$0xff] }
 0x27e   :  { %v1092_v55 = vsub.f32 %v2305_v44, %v1016_v51  ;;  %v1812_v34 = vpop.eup %1811  ;;  %1831 = vpow2.f32 %v1132_v58  ;;  %v1093_v54 = vsub.f32 %v2313_v56, %v1016_v51 }
 0x27f   :  { %v1814_v36 = vpop.eup %1813  ;;  %1833 = vpow2.f32 %v1146_v60  ;;  %v1134_v38 = vmul.f32 1.442695, %v1054_v14  ;;  %v1136_v42 = vmul.f32 1.442695, %v1055_v43  ;;  %1246 = vadd.xlane.f32.xlu1 %v1245_v63  ;;  %v2729_v15 = vadd.f32 %v1812_v34, %v1810_v10  ;;  %v3185_v60 = vld [vmem:[#allocation24_spill] sm:$0xff] }
 0x280   :  { %v1210_v32 = vmul.f32 1.442695, %v1092_v55  ;;  %v1816_v61 = vpop.eup %1815  ;;  %1835 = vpow2.f32 %v1148_v48  ;;  %v1212_v1 = vmul.f32 1.442695, %v1093_v54  ;;  %v1001_v11 = vpop.permute.xlu1 %1000 }
 0x281   :  { %v946_v19 = vpop.permute.xlu0 %945  ;;  %v1818_v21 = vpop.eup %1817  ;;  %1837 = vpow2.f32 %v1134_v38  ;;  %v1086_v44 = vsub.f32 %v2273_v20, %v1001_v11  ;;  %v1087_v56 = vsub.f32 %v2277_v22, %v1001_v11  ;;  %v1248_v16 = vadd.f32 %v1816_v61, %v1814_v36  ;;  %v3186_v38 = vld [vmem:[#allocation12_spill] sm:$0xff] }
 0x282   :  { %v1064_v4 = vsub.f32 %v2327_v13, %v946_v19  ;;  %v1820_v49 = vpop.eup %1819  ;;  %1839 = vpow2.f32 %v1136_v42  ;;  %v1065_v53 = vsub.f32 %v2335_v25, %v946_v19 }
 0x283   :  { %v1822_v30 = vpop.eup %1821  ;;  %1841 = vpow2.f32 %v1210_v32  ;;  %v1198_v18 = vmul.f32 1.442695, %v1086_v44  ;;  %v1200_v37 = vmul.f32 1.442695, %v1087_v56  ;;  %1249 = vadd.xlane.f32.xlu0 %v1248_v16  ;;  %1294 = vadd.xlane.f32.xlu1 %v1293_v9  ;;  %v2735_v22 = vadd.f32 %v1820_v49, %v1818_v21  ;;  %v3187_v32 = vld [vmem:[#allocation14_spill] sm:$0xff]  ;;  %v3189_v21 = vld [vmem:[#allocation25_spill] sm:$0xff] }
 0x284   :  { %v1154_v41 = vmul.f32 1.442695, %v1064_v4  ;;  %v1824_v12 = vpop.eup %1823  ;;  %1843 = vpow2.f32 %v1212_v1  ;;  %v1156_v6 = vmul.f32 1.442695, %v1065_v53  ;;  %v931_v20 = vpop.permute.xlu1 %930  ;;  %v3188_v1 = vld [vmem:[#allocation23_spill] sm:$0xff] }
 0x285   :  { %v1026_v8 = vpop.permute.xlu0 %1025  ;;  %v1826_v13 = vpop.eup %1825  ;;  %1845 = vpow2.f32 %v1198_v18  ;;  %v1058_v23 = vsub.f32 %v2295_v31, %v931_v20  ;;  %v1059_v25 = vsub.f32 %v2299_v39, %v931_v20  ;;  %v1296_v57 = vadd.f32 %v1824_v12, %v1822_v30 }
 0x286   :  { %v1096_v26 = vsub.f32 %v3180_v27, %v1026_v8  ;;  %v1828_v5 = vpop.eup %1827  ;;  %1847 = vpow2.f32 %v1200_v37  ;;  %v1097_v52 = vsub.f32 %v3181_v45, %v1026_v8  ;;  %v3191_v8 = vld [vmem:[#allocation15_spill] sm:$0xff] }
 0x287   :  { %v1830_v59 = vpop.eup %1829  ;;  %1849 = vpow2.f32 %v1154_v41  ;;  %v1142_v62 = vmul.f32 1.442695, %v1058_v23  ;;  %v1144_v47 = vmul.f32 1.442695, %v1059_v25  ;;  %1297 = vadd.xlane.f32.xlu0 %v1296_v57  ;;  %v2741_v24 = vadd.f32 %v1828_v5, %v1826_v13 }
 0x288   :  { %v1218_v2 = vmul.f32 1.442695, %v1096_v26  ;;  %v1832_v7 = vpop.eup %1831  ;;  %1851 = vpow2.f32 %v1156_v6  ;;  %v1220_v40 = vmul.f32 1.442695, %v1097_v52  ;;  %v1011_v9 = vpop.permute.xlu1 %1010  ;;  %v3190_v6 = vld [vmem:[#allocation13_spill] sm:$0xff] }
 0x289   :  { %v956_v31 = vpop.permute.xlu0 %955  ;;  %v1834_v39 = vpop.eup %1833  ;;  %1853 = vpow2.f32 %v1142_v62  ;;  %v1090_v28 = vsub.f32 %v3182_v50, %v1011_v9  ;;  %v1091_v3 = vsub.f32 %v3183_v17, %v1011_v9  ;;  %v1251_v48 = vadd.f32 %v1832_v7, %v1830_v59  ;;  %v3192_v59 = vld [vmem:[#allocation18_spill] sm:$0xff] }
 0x28a   :  { %v1068_v35 = vsub.f32 %v3184_v33, %v956_v31  ;;  %v1836_v58 = vpop.eup %1835  ;;  %1855 = vpow2.f32 %v1144_v47  ;;  %v1069_v46 = vsub.f32 %v3185_v60, %v956_v31  ;;  %v3193_v47 = vld [vmem:[#allocation20_spill] sm:$0xff] }
 0x28b   :  { %v1838_v0 = vpop.eup %1837  ;;  %1857 = vpow2.f32 %v1218_v2  ;;  %v1206_v51 = vmul.f32 1.442695, %v1090_v28  ;;  %v1208_v10 = vmul.f32 1.442695, %v1091_v3  ;;  %1252 = vadd.xlane.f32.xlu1 %v1251_v48  ;;  %v2747_v63 = vadd.f32 %v1836_v58, %v1834_v39  ;;  %v3194_v3 = vld [vmem:[#allocation19_spill] sm:$0xff] }
 0x28c   :  { %v1162_v14 = vmul.f32 1.442695, %v1068_v35  ;;  %v1840_v43 = vpop.eup %1839  ;;  %1859 = vpow2.f32 %v1220_v40  ;;  %v1164_v55 = vmul.f32 1.442695, %v1069_v46  ;;  %v941_v34 = vpop.permute.xlu1 %940  ;;  %v3195_v35 = vld [vmem:[#allocation21_spill] sm:$0xff] }
 0x28d   :  { %v1036_v54 = vpop.permute.xlu0 %1035  ;;  %v1842_v36 = vpop.eup %1841  ;;  %1861 = vpow2.f32 %v1206_v51  ;;  %v1062_v42 = vsub.f32 %v3186_v38, %v941_v34  ;;  %v1063_v61 = vsub.f32 %v3187_v32, %v941_v34  ;;  %v1254_v56 = vadd.f32 %v1840_v43, %v1838_v0 }
 0x28e   :  { %v1100_v11 = vsub.f32 %v3188_v1, %v1036_v54  ;;  %v1844_v19 = vpop.eup %1843  ;;  %1863 = vpow2.f32 %v1208_v10  ;;  %v1101_v44 = vsub.f32 %v3189_v21, %v1036_v54  ;;  %v3197_v21 = vld [vmem:[#allocation28_spill] sm:$0xff] }
 0x28f   :  { %v1846_v4 = vpop.eup %1845  ;;  %1865 = vpow2.f32 %v1162_v14  ;;  %v1150_v49 = vmul.f32 1.442695, %v1062_v42  ;;  %v1152_v53 = vmul.f32 1.442695, %v1063_v61  ;;  %1255 = vadd.xlane.f32.xlu0 %v1254_v56  ;;  %1300 = vadd.xlane.f32.xlu1 %v2729_v15  ;;  %v1311_v41 = vadd.f32 %v1844_v19, %v1842_v36  ;;  %v3196_v19 = vld [vmem:[#allocation26_spill] sm:$0xff] }
 0x290   :  { %v1226_v16 = vmul.f32 1.442695, %v1100_v11  ;;  %v1848_v30 = vpop.eup %1847  ;;  %1867 = vpow2.f32 %v1164_v55  ;;  %v1228_v18 = vmul.f32 1.442695, %v1101_v44  ;;  %v1021_v37 = vpop.permute.xlu1 %1020  ;;  %v3198_v44 = vsub.f32 %v3196_v19, %v3197_v21 }
 0x291   :  { %v1850_v12 = vpop.eup %1849  ;;  %1869 = vpow2.f32 %v1150_v49  ;;  %v1094_v20 = vsub.f32 %v3190_v6, %v1021_v37  ;;  %v1095_v13 = vsub.f32 %v3191_v8, %v1021_v37  ;;  %v1302_v23 = vadd.f32 %v1848_v30, %v1846_v4  ;;  %v3199_v4 = vld [vmem:[#allocation29_spill] sm:$0xff]  ;;  %v3200_v49 = vld [vmem:[#allocation31_spill] sm:$0xff]  ;;  %v3206_v6 = vld [vmem:[#allocation34_spill] sm:$0xff] }
 0x292   :  { %v1852_v25 = vpop.eup %1851  ;;  %1871 = vpow2.f32 %v1152_v53  ;;  %v782_v56 = vmul.f32 1.442695, %v3198_v44  ;;  %v3201_v53 = vsub.f32 %v3199_v4, %v3200_v49  ;;  %v3202_v30 = vld [vmem:[#allocation27_spill] sm:$0xff] }
 0x293   :  { %v1854_v27 = vpop.eup %1853  ;;  %1873 = vpow2.f32 %v1226_v16  ;;  %v1214_v26 = vmul.f32 1.442695, %v1094_v20  ;;  %v1216_v5 = vmul.f32 1.442695, %v1095_v13  ;;  %v1269_v45 = vadd.f32 %v1852_v25, %v1850_v12  ;;  %1303 = vadd.xlane.f32.xlu0 %v1302_v23  ;;  %1258 = vadd.xlane.f32.xlu1 %v2735_v22  ;;  %v3205_v12 = vld [vmem:[#allocation32_spill] sm:$0xff]  ;;  %v3208_v13 = vld [vmem:[#allocation33_spill] sm:$0xff] }
 0x294   :  { %v1856_v52 = vpop.eup %1855  ;;  %1875 = vpow2.f32 %v1228_v18  ;;  %v951_v15 = vpop.permute.xlu1 %950  ;;  %v814_v16 = vmul.f32 1.442695, %v3201_v53  ;;  %v3203_v18 = vld [vmem:[#allocation30_spill] sm:$0xff]  ;;  %v3207_v20 = vsub.f32 %v3205_v12, %v3206_v6  ;;  %v3209_v23 = vld [vmem:[#allocation35_spill] sm:$0xff]  ;;  %v3226_v53 = vld [vmem:[#allocation44_spill] sm:$0xff] }
 0x295   :  { %v1858_v57 = vpop.eup %1857  ;;  %1877 = vpow2.f32 %v1214_v26  ;;  %v1066_v62 = vsub.f32 %v3192_v59, %v951_v15  ;;  %v1067_v2 = vsub.f32 %v3193_v47, %v951_v15  ;;  %v1260_v7 = vadd.f32 %v1856_v52, %v1854_v27  ;;  %v3212_v52 = vld [vmem:[#allocation39_spill] sm:$0xff]  ;;  %v734_v47 = vld [vmem:[#allocation3 + $0x80] sm:$0xff] }
 0x296   :  { %v1860_v40 = vpop.eup %1859  ;;  %1879 = vpow2.f32 %v1216_v5  ;;  %v3204_v37 = vsub.f32 %v3202_v30, %v3203_v18  ;;  %v784_v8 = vmul.f32 1.442695, %v3207_v20  ;;  %v3210_v25 = vsub.f32 %v3208_v13, %v3209_v23  ;;  %v718_v5 = vld [vmem:[#allocation3] sm:$0xff]  ;;  %v721_v20 = vld [vmem:[#allocation3 + $0x18] sm:$0xff] }
 0x297   :  { %v1862_v9 = vpop.eup %1861  ;;  %v1158_v31 = vmul.f32 1.442695, %v1066_v62  ;;  %v1160_v39 = vmul.f32 1.442695, %v1067_v2  ;;  %v1317_v50 = vadd.f32 %v1860_v40, %v1858_v57  ;;  %1261 = vadd.xlane.f32.xlu0 %v1260_v7  ;;  %1306 = vadd.xlane.f32.xlu1 %v2741_v24  ;;  %v3230_v13 = vld [vmem:[#allocation50_spill] sm:$0xff] }
 0x298   :  { %v1864_v28 = vpop.eup %1863  ;;  %v1031_v17 = vpop.permute.xlu1 %1030  ;;  %v786_v27 = vmul.f32 1.442695, %v3210_v25 }
 0x299   :  { %v1866_v22 = vpop.eup %1865  ;;  %1881 = vpow2.f32 %v1158_v31  ;;  %v1098_v33 = vsub.f32 %v3194_v3, %v1031_v17  ;;  %v1099_v58 = vsub.f32 %v3195_v35, %v1031_v17  ;;  %v1308_v60 = vadd.f32 %v1864_v28, %v1862_v9  ;;  %v735_v9 = vld [vmem:[#allocation3 + $0x88] sm:$0xff]  ;;  %v3214_v31 = vld [vmem:[#allocation36_spill] sm:$0xff] }
 0x29a   :  { %v1868_v46 = vpop.eup %1867  ;;  %1883 = vpow2.f32 %v1160_v39  ;;  %v3215_v39 = vld [vmem:[#allocation38_spill] sm:$0xff] }
 0x29b   :  { %v1870_v48 = vpop.eup %1869  ;;  %v1222_v0 = vmul.f32 1.442695, %v1098_v33  ;;  %v1224_v51 = vmul.f32 1.442695, %v1099_v58  ;;  %v1275_v10 = vadd.f32 %v1868_v46, %v1866_v22  ;;  %1309 = vadd.xlane.f32.xlu0 %v1308_v60  ;;  %1264 = vadd.xlane.f32.xlu1 %v2747_v63  ;;  %v719_v58 = vld [vmem:[#allocation3 + $0x8] sm:$0xff]  ;;  %v3217_v60 = vld [vmem:[#allocation40_spill] sm:$0xff] }
 0x29c   :  { %v1872_v14 = vpop.eup %1871  ;;  %v3218_v46 = vld [vmem:[#allocation42_spill] sm:$0xff] }
 0x29d   :  { %v1874_v43 = vpop.eup %1873  ;;  %1885 = vpow2.f32 %v1222_v0  ;;  %v1266_v24 = vadd.f32 %v1872_v14, %v1870_v48  ;;  %v3219_v48 = vsub.f32 %v3217_v60, %v3218_v46  ;;  %v3221_v14 = vld [vmem:[#allocation43_spill] sm:$0xff] }
 0x29e   :  { %v1876_v55 = vpop.eup %1875  ;;  %1887 = vpow2.f32 %v1224_v51 }
 0x29f   :  { %v1878_v34 = vpop.eup %1877  ;;  %v1323_v54 = vadd.f32 %v1876_v55, %v1874_v43  ;;  %1267 = vadd.xlane.f32.xlu0 %v1266_v24  ;;  %1312 = vadd.xlane.f32.xlu1 %v1311_v41  ;;  %1889 = vpow2.f32 %v782_v56  ;;  %v816_v41 = vmul.f32 1.442695, %v3204_v37  ;;  %v820_v0 = vmul.f32 1.442695, %v3219_v48  ;;  %v736_v56 = vld [vmem:[#allocation3 + $0x90] sm:$0xff] }
 0x2a0   :  { %v1880_v36 = vpop.eup %1879  ;;  %1891 = vpow2.f32 %v814_v16  ;;  %v3227_v16 = vld [vmem:[#allocation46_spill] sm:$0xff] }
 0x2a1   :  { %v1314_v38 = vadd.f32 %v1880_v36, %v1878_v34  ;;  %1893 = vpow2.f32 %v816_v41  ;;  %v3228_v30 = vsub.f32 %v3226_v53, %v3227_v16 }
 0x2a2   :  { %1895 = vpow2.f32 %v784_v8  ;;  %v3229_v8 = vld [vmem:[#allocation48_spill] sm:$0xff] }
 0x2a3   :  { %v1882_v42 = vpop.eup %1881  ;;  %1315 = vadd.xlane.f32.xlu0 %v1314_v38  ;;  %1270 = vadd.xlane.f32.xlu1 %v1269_v45  ;;  %1897 = vpow2.f32 %v786_v27  ;;  %v3211_v45 = vld [vmem:[#allocation37_spill] sm:$0xff]  ;;  %v720_v38 = vld [vmem:[#allocation3 + $0x10] sm:$0xff]  ;;  %v792_v18 = vmul.f32 1.442695, %v3228_v30  ;;  %v3231_v23 = vsub.f32 %v3229_v8, %v3230_v13  ;;  %v1427_v13 = vld [vmem:[#allocation2 + $0x8] sm:$0xff] }
 0x2a4   :  { %v1884_v32 = vpop.eup %1883  ;;  %v3213_v15 = vsub.f32 %v3211_v45, %v3212_v52 }
 0x2a5   :  { %v1272_v61 = vadd.f32 %v1884_v32, %v1882_v42  ;;  %v3223_v42 = vld [vmem:[#allocation45_spill] sm:$0xff]  ;;  %v3224_v32 = vld [vmem:[#allocation47_spill] sm:$0xff]  ;;  %v824_v25 = vmul.f32 1.442695, %v3231_v23 }
 0x2a6   :  { %v818_v57 = vmul.f32 1.442695, %v3213_v15 }
 0x2a7   :  { %v1886_v1 = vpop.eup %1885  ;;  %1273 = vadd.xlane.f32.xlu0 %v1272_v61  ;;  %1318 = vadd.xlane.f32.xlu1 %v1317_v50  ;;  %v3216_v50 = vsub.f32 %v3214_v31, %v3215_v39  ;;  %v3225_v61 = vsub.f32 %v3223_v42, %v3224_v32  ;;  %v3235_v31 = vld [vmem:[#allocation53_spill] sm:$0xff]  ;;  %v3236_v39 = vld [vmem:[#allocation55_spill] sm:$0xff] }
 0x2a8   :  { %v1888_v11 = vpop.eup %1887  ;;  %1899 = vpow2.f32 %v818_v57 }
 0x2a9   :  { %v1320_v63 = vadd.f32 %v1888_v11, %v1886_v1  ;;  %v1890_v26 = vpop.eup %1889  ;;  %v788_v28 = vmul.f32 1.442695, %v3216_v50  ;;  %v822_v1 = vmul.f32 1.442695, %v3225_v61  ;;  %v3237_v50 = vsub.f32 %v3235_v31, %v3236_v39 }
 0x2aa   :  { %v1892_v59 = vpop.eup %1891  ;;  %v846_v62 = vmul.f32 %v1890_v26, %v718_v5  ;;  %v3232_v26 = vld [vmem:[#allocation49_spill] sm:$0xff]  ;;  %v3233_v5 = vld [vmem:[#allocation51_spill] sm:$0xff] }
 0x2ab   :  { %1321 = vadd.xlane.f32.xlu0 %v1320_v63  ;;  %1276 = vadd.xlane.f32.xlu1 %v1275_v10  ;;  %v1894_v7 = vpop.eup %1893  ;;  %v862_v17 = vmul.f32 %v1892_v59, %v734_v47  ;;  %1901 = vpow2.f32 %v788_v28  ;;  %v3220_v10 = vld [vmem:[#allocation41_spill] sm:$0xff]  ;;  %v3234_v45 = vsub.f32 %v3232_v26, %v3233_v5  ;;  %v826_v28 = vmul.f32 1.442695, %v3237_v50  ;;  %v739_v5 = vld [vmem:[#allocation3 + $0xa8] sm:$0xff]  ;;  %v1428_v50 = vld [vmem:[#allocation2 + $0x10] sm:$0xff] }
 0x2ac   :  { %v1896_v3 = vpop.eup %1895  ;;  %v863_v33 = vmul.f32 %v1894_v7, %v735_v9  ;;  %v3222_v43 = vsub.f32 %v3220_v10, %v3221_v14  ;;  %1903 = vpow2.f32 %v820_v0  ;;  %v722_v7 = vld [vmem:[#allocation3 + $0x20] sm:$0xff] }
 0x2ad   :  { %v847_v34 = vmul.f32 %v1896_v3, %v719_v58  ;;  %v794_v52 = vmul.f32 1.442695, %v3234_v45  ;;  %v724_v45 = vld [vmem:[#allocation3 + $0x30] sm:$0xff] }
 0x2ae   :  { %v790_v24 = vmul.f32 1.442695, %v3222_v43 }
 0x2af   :  { %1324 = vadd.xlane.f32.xlu1 %v1323_v54  ;;  %v1898_v54 = vpop.eup %1897 }
 0x2b0   :  { %1905 = vpow2.f32 %v790_v24  ;;  %v848_v19 = vmul.f32 %v1898_v54, %v720_v38  ;;  %v3239_v54 = vld [vmem:[#allocation54_spill] sm:$0xff] }
 0x2b2   :  { %v1900_v21 = vpop.eup %1899 }
 0x2b3   :  { %v864_v41 = vmul.f32 %v1900_v21, %v736_v56  ;;  %v723_v21 = vld [vmem:[#allocation3 + $0x28] sm:$0xff]  ;;  %v3241_v56 = vld [vmem:[#allocation56_spill] sm:$0xff] }
 0x2b5   :  { %v1902_v12 = vpop.eup %1901 }
 0x2b6   :  { %v1904_v57 = vpop.eup %1903  ;;  %v849_v59 = vmul.f32 %v1902_v12, %v721_v20 }
 0x2ec   :  { %v1232_v2 = vpop.xlane.xlu1 %1231 }
 0x2ed   :  { %v1326_v40 = vadd.f32 %v1232_v2, %v846_v62  ;;  %v1906_v62 = vpop.eup %1905  ;;  %v737_v2 = vld [vmem:[#allocation3 + $0x98] sm:$0xff] }
 0x2ee   :  { %v850_v58 = vmul.f32 %v1906_v62, %v722_v7 }
 0x2ef   :  { %1359 = vst.msk [vmem:[#allocation3] sm:$0xff] %vm44_vm0, %v1326_v40 }
 0x2f0   :  { %v1280_v22 = vpop.xlane.xlu0 %1279 }
 0x2f1   :  { %v1342_v35 = vadd.f32 %v1280_v22, %v862_v17 }
 0x2f2   :  { %v1283_v51 = vpop.xlane.xlu1 %1282 }
 0x2f3   :  { %v1343_v55 = vadd.f32 %v1283_v51, %v863_v33  ;;  %1375 = vst.msk [vmem:[#allocation3 + $0x80] sm:$0xff] %vm44_vm0, %v1342_v35  ;;  %v1426_v33 = vld [vmem:[#allocation2] sm:$0xff]  ;;  %v865_v35 = vmul.f32 %v1904_v57, %v737_v2  ;;  %v3250_v2 = vld [vmem:[#allocation61_spill] sm:$0xff] }
 0x2f4   :  { %v1235_v36 = vpop.xlane.xlu0 %1234  ;;  %v738_v51 = vld [vmem:[#allocation3 + $0xa0] sm:$0xff]  ;;  %v3251_v7 = vsub.f32 %v3250_v2, %v2541_v29 }
 0x2f5   :  { %1376 = vst.msk [vmem:[#allocation3 + $0x88] sm:$0xff] %vm44_vm0, %v1343_v55  ;;  %v1327_v11 = vadd.f32 %v1235_v36, %v847_v34  ;;  %v1442_v55 = vld [vmem:[#allocation2 + $0x80] sm:$0xff]  ;;  %v3238_v34 = vld [vmem:[#allocation52_spill] sm:$0xff] }
 0x2f6   :  { %v1458_v63 = vld [vmem:[#allocation3] sm:$0xff]  ;;  %v3240_v36 = vsub.f32 %v3238_v34, %v3239_v54 }
 0x2f7   :  { %1907 = vlog2.f32 %v1458_v63  ;;  %1360 = vst.msk [vmem:[#allocation3 + $0x8] sm:$0xff] %vm44_vm0, %v1327_v11  ;;  %v1443_v63 = vld [vmem:[#allocation2 + $0x88] sm:$0xff]  ;;  %v3248_v57 = vld [vmem:[#allocation62_spill] sm:$0xff] }
 0x2f8   :  { %v1238_v44 = vpop.xlane.xlu0 %1237  ;;  %1909 = vpow2.f32 %v822_v1  ;;  %v796_v38 = vmul.f32 1.442695, %v3240_v36  ;;  %v1444_v36 = vld [vmem:[#allocation2 + $0x90] sm:$0xff] }
 0x2f9   :  { %v1328_v49 = vadd.f32 %v1238_v44, %v848_v19 }
 0x2fa   :  { %v1474_v4 = vld [vmem:[#allocation3 + $0x80] sm:$0xff] }
 0x2fb   :  { %1911 = vlog2.f32 %v1474_v4  ;;  %1361 = vst.msk [vmem:[#allocation3 + $0x10] sm:$0xff] %vm44_vm0, %v1328_v49  ;;  %v3242_v4 = vld [vmem:[#allocation58_spill] sm:$0xff] }
 0x2fc   :  { %v1475_v37 = vld [vmem:[#allocation3 + $0x88] sm:$0xff]  ;;  %v1286_v6 = vpop.xlane.xlu0 %1285  ;;  %v3243_v49 = vsub.f32 %v3241_v56, %v3242_v4  ;;  %v3261_v56 = vld [vmem:[#allocation68_spill] sm:$0xff]  ;;  %v3262_v4 = vld [vmem:[#allocation70_spill] sm:$0xff] }
 0x2fd   :  { %1913 = vlog2.f32 %v1475_v37  ;;  %v1344_v27 = vadd.f32 %v1286_v6, %v864_v41  ;;  %v3245_v37 = vld [vmem:[#allocation59_spill] sm:$0xff] }
 0x2fe   :  { %1915 = vpow2.f32 %v792_v18  ;;  %v1459_v15 = vld [vmem:[#allocation3 + $0x8] sm:$0xff]  ;;  %v828_v53 = vmul.f32 1.442695, %v3243_v49  ;;  %v3244_v18 = vld [vmem:[#allocation57_spill] sm:$0xff]  ;;  %v3263_v49 = vsub.f32 %v3261_v56, %v3262_v4  ;;  %v728_v56 = vld [vmem:[#allocation3 + $0x50] sm:$0xff] }
 0x2ff   :  { %1917 = vlog2.f32 %v1459_v15  ;;  %1377 = vst.msk [vmem:[#allocation3 + $0x90] sm:$0xff] %vm44_vm0, %v1344_v27  ;;  %v3246_v41 = vsub.f32 %v3244_v18, %v3245_v37  ;;  %v3247_v15 = vld [vmem:[#allocation60_spill] sm:$0xff]  ;;  %v3265_v18 = vld [vmem:[#allocation73_spill] sm:$0xff] }
 0x300   :  { %v1241_v47 = vpop.xlane.xlu1 %1240  ;;  %1919 = vpow2.f32 %v824_v25 }
 0x301   :  { %v1908_v40 = vpop.eup %1907  ;;  %v1329_v9 = vadd.f32 %v1241_v47, %v849_v59  ;;  %1921 = vpow2.f32 %v794_v52  ;;  %v798_v12 = vmul.f32 1.442695, %v3246_v41  ;;  %v3249_v59 = vsub.f32 %v3247_v15, %v3248_v57  ;;  %v3267_v57 = vld [vmem:[#allocation72_spill] sm:$0xff] }
 0x302   :  { %v1491_v17 = vmul.f32 0.6931472, %v1908_v40  ;;  %v1460_v22 = vld [vmem:[#allocation3 + $0x10] sm:$0xff]  ;;  %v1910_v3 = vpop.eup %1909  ;;  %v830_v40 = vmul.f32 1.442695, %v3251_v7 }
 0x303   :  { %1923 = vlog2.f32 %v1460_v22  ;;  %1362 = vst.msk [vmem:[#allocation3 + $0x18] sm:$0xff] %vm44_vm0, %v1329_v9  ;;  %v866_v1 = vmul.f32 %v1910_v3, %v738_v51  ;;  %v800_v62 = vmul.f32 1.442695, %v3249_v59  ;;  %v3268_v59 = vld [vmem:[#allocation74_spill] sm:$0xff] }
 0x304   :  { %v1554_v46 = vadd.f32 %v1491_v17, %v1426_v33  ;;  %v1289_v48 = vpop.xlane.xlu1 %1288  ;;  %v1244_v0 = vpop.xlane.xlu0 %1243  ;;  %1925 = vpow2.f32 %v826_v28 }
 0x305   :  { %v1912_v60 = vpop.eup %1911  ;;  %v1345_v14 = vadd.f32 %v1289_v48, %v865_v35  ;;  %v1330_v43 = vadd.f32 %v1244_v0, %v850_v58  ;;  %v740_v35 = vld [vmem:[#allocation3 + $0xb0] sm:$0xff] }
 0x306   :  { %v1523_v10 = vmul.f32 0.6931472, %v1912_v60  ;;  %1586 = vst.msk [vmem:[%s3021_s2] sm:$0xff] %vm44_vm0, %v1554_v46  ;;  %v1476_v42 = vld [vmem:[#allocation3 + $0x90] sm:$0xff]  ;;  %v3252_v60 = vld [vmem:[#allocation63_spill] sm:$0xff]  ;;  %v3253_v46 = vld [vmem:[#allocation65_spill] sm:$0xff] }
 0x307   :  { %v1914_v24 = vpop.eup %1913  ;;  %1927 = vlog2.f32 %v1476_v42  ;;  %1378 = vst.msk [vmem:[#allocation3 + $0x98] sm:$0xff] %vm44_vm0, %v1345_v14  ;;  %1363 = vst.msk [vmem:[#allocation3 + $0x20] sm:$0xff] %vm44_vm0, %v1330_v43  ;;  %v3254_v48 = vsub.f32 %v3252_v60, %v3253_v46  ;;  %v3255_v14 = vld [vmem:[#allocation64_spill] sm:$0xff]  ;;  %v3256_v43 = vld [vmem:[#allocation66_spill] sm:$0xff] }
 0x308   :  { %v1525_v32 = vmul.f32 0.6931472, %v1914_v24  ;;  %v1570_v61 = vadd.f32 %v1523_v10, %v1442_v55  ;;  %v1916_v11 = vpop.eup %1915  ;;  %v1292_v19 = vpop.xlane.xlu0 %1291  ;;  %1929 = vpow2.f32 %v796_v38  ;;  %v3257_v24 = vsub.f32 %v3255_v14, %v3256_v43  ;;  %v3270_v46 = vld [vmem:[#allocation75_spill] sm:$0xff] }
 0x309   :  { %v1918_v44 = vpop.eup %1917  ;;  %v1346_v30 = vadd.f32 %v1292_v19, %v866_v1  ;;  %v851_v23 = vmul.f32 %v1916_v11, %v723_v21  ;;  %v832_v0 = vmul.f32 1.442695, %v3254_v48  ;;  %v725_v21 = vld [vmem:[#allocation3 + $0x38] sm:$0xff] }
 0x30a   :  { %v1571_v16 = vadd.f32 %v1525_v32, %v1443_v63  ;;  %1602 = vst.msk [vmem:[%s3021_s2 + $0x80] sm:$0xff] %vm44_vm0, %v1570_v61  ;;  %v1493_v6 = vmul.f32 0.6931472, %v1918_v44  ;;  %v1461_v20 = vld [vmem:[#allocation3 + $0x18] sm:$0xff]  ;;  %v1920_v8 = vpop.eup %1919  ;;  %v802_v55 = vmul.f32 1.442695, %v3257_v24 }
 0x30b   :  { %1931 = vlog2.f32 %v1461_v20  ;;  %1379 = vst.msk [vmem:[#allocation3 + $0xa0] sm:$0xff] %vm44_vm0, %v1346_v30  ;;  %v1922_v25 = vpop.eup %1921  ;;  %v867_v28 = vmul.f32 %v1920_v8, %v739_v5  ;;  %v3258_v32 = vld [vmem:[#allocation67_spill] sm:$0xff]  ;;  %v3259_v61 = vld [vmem:[#allocation69_spill] sm:$0xff]  ;;  %v726_v5 = vld [vmem:[#allocation3 + $0x40] sm:$0xff] }
 0x30c   :  { %1603 = vst.msk [vmem:[%s3021_s2 + $0x88] sm:$0xff] %vm44_vm0, %v1571_v16  ;;  %v1555_v27 = vadd.f32 %v1493_v6, %v1427_v13  ;;  %v1247_v26 = vpop.xlane.xlu1 %1246  ;;  %1933 = vpow2.f32 %v828_v53  ;;  %v852_v17 = vmul.f32 %v1922_v25, %v724_v45  ;;  %v3260_v1 = vsub.f32 %v3258_v32, %v3259_v61  ;;  %v3264_v30 = vld [vmem:[#allocation71_spill] sm:$0xff]  ;;  %v1429_v8 = vld [vmem:[#allocation2 + $0x18] sm:$0xff]  ;;  %v3273_v24 = vld [vmem:[#allocation76_spill] sm:$0xff] }
 0x30d   :  { %v1924_v52 = vpop.eup %1923  ;;  %v1331_v47 = vadd.f32 %v1247_v26, %v851_v23  ;;  %1935 = vpow2.f32 %v798_v12  ;;  %v834_v53 = vmul.f32 1.442695, %v3263_v49  ;;  %v3266_v37 = vsub.f32 %v3264_v30, %v3265_v18  ;;  %v741_v26 = vld [vmem:[#allocation3 + $0xb8] sm:$0xff]  ;;  %v1446_v32 = vld [vmem:[#allocation2 + $0xa0] sm:$0xff]  ;;  %v3276_v49 = vld [vmem:[#allocation79_spill] sm:$0xff] }
 0x30e   :  { %1587 = vst.msk [vmem:[%s3021_s2 + $0x8] sm:$0xff] %vm44_vm0, %v1555_v27  ;;  %v1495_v9 = vmul.f32 0.6931472, %v1924_v52  ;;  %v1477_v31 = vld [vmem:[#allocation3 + $0x98] sm:$0xff]  ;;  %v1462_v39 = vld [vmem:[#allocation3 + $0x20] sm:$0xff]  ;;  %v1926_v22 = vpop.eup %1925 }
 0x30f   :  { %1937 = vlog2.f32 %v1477_v31  ;;  %1364 = vst.msk [vmem:[#allocation3 + $0x28] sm:$0xff] %vm44_vm0, %v1331_v47  ;;  %v868_v38 = vmul.f32 %v1926_v22, %v740_v35  ;;  %v804_v11 = vmul.f32 1.442695, %v3260_v1  ;;  %v836_v41 = vmul.f32 1.442695, %v3266_v37  ;;  %v1445_v31 = vld [vmem:[#allocation2 + $0x98] sm:$0xff] }
 0x310   :  { %v1556_v3 = vadd.f32 %v1495_v9, %v1428_v50  ;;  %1939 = vlog2.f32 %v1462_v39  ;;  %v1295_v33 = vpop.xlane.xlu1 %1294  ;;  %v1250_v29 = vpop.xlane.xlu0 %1249  ;;  %v1430_v22 = vld [vmem:[#allocation2 + $0x20] sm:$0xff]  ;;  %v727_v35 = vld [vmem:[#allocation3 + $0x48] sm:$0xff]  ;;  %v3271_v48 = vld [vmem:[#allocation77_spill] sm:$0xff] }
 0x311   :  { %v1928_v58 = vpop.eup %1927  ;;  %1941 = vpow2.f32 %v800_v62  ;;  %v1347_v51 = vadd.f32 %v1295_v33, %v867_v28  ;;  %v1332_v10 = vadd.f32 %v1250_v29, %v852_v17  ;;  %v3269_v62 = vsub.f32 %v3267_v57, %v3268_v59  ;;  %v729_v59 = vld [vmem:[#allocation3 + $0x58] sm:$0xff] }
 0x312   :  { %1943 = vpow2.f32 %v830_v40  ;;  %1588 = vst.msk [vmem:[%s3021_s2 + $0x10] sm:$0xff] %vm44_vm0, %v1556_v3  ;;  %v1527_v34 = vmul.f32 0.6931472, %v1928_v58  ;;  %v1478_v54 = vld [vmem:[#allocation3 + $0xa0] sm:$0xff]  ;;  %v1930_v42 = vpop.eup %1929 }
 0x313   :  { %1945 = vlog2.f32 %v1478_v54  ;;  %1380 = vst.msk [vmem:[#allocation3 + $0xa8] sm:$0xff] %vm44_vm0, %v1347_v51  ;;  %1365 = vst.msk [vmem:[#allocation3 + $0x30] sm:$0xff] %vm44_vm0, %v1332_v10  ;;  %v853_v13 = vmul.f32 %v1930_v42, %v725_v21  ;;  %v806_v47 = vmul.f32 1.442695, %v3269_v62  ;;  %v742_v58 = vld [vmem:[#allocation3 + $0xc0] sm:$0xff]  ;;  %v744_v62 = vld [vmem:[#allocation3 + $0xd0] sm:$0xff] }
 0x314   :  { %v1572_v63 = vadd.f32 %v1527_v34, %v1444_v36  ;;  %v1298_v19 = vpop.xlane.xlu0 %1297  ;;  %1947 = vpow2.f32 %v832_v0  ;;  %v3272_v0 = vsub.f32 %v3270_v46, %v3271_v48 }
 0x315   :  { %v1932_v44 = vpop.eup %1931  ;;  %v1348_v16 = vadd.f32 %v1298_v19, %v868_v38  ;;  %1949 = vpow2.f32 %v802_v55  ;;  %v3274_v55 = vld [vmem:[#allocation78_spill] sm:$0xff] }
 0x316   :  { %1604 = vst.msk [vmem:[%s3021_s2 + $0x90] sm:$0xff] %vm44_vm0, %v1572_v63  ;;  %v1497_v12 = vmul.f32 0.6931472, %v1932_v44  ;;  %v1463_v6 = vld [vmem:[#allocation3 + $0x28] sm:$0xff]  ;;  %v1934_v20 = vpop.eup %1933  ;;  %v808_v51 = vmul.f32 1.442695, %v3272_v0  ;;  %v3275_v34 = vsub.f32 %v3273_v24, %v3274_v55 }
 0x317   :  { %1951 = vlog2.f32 %v1463_v6  ;;  %1381 = vst.msk [vmem:[#allocation3 + $0xb0] sm:$0xff] %vm44_vm0, %v1348_v16  ;;  %v1936_v23 = vpop.eup %1935  ;;  %v869_v50 = vmul.f32 %v1934_v20, %v741_v26  ;;  %v743_v44 = vld [vmem:[#allocation3 + $0xc8] sm:$0xff]  ;;  %v3280_v6 = vld [vmem:[#allocation82_spill] sm:$0xff]  ;;  %v745_v24 = vld [vmem:[#allocation3 + $0xd8] sm:$0xff] }
 0x318   :  { %1953 = vpow2.f32 %v804_v11  ;;  %v1557_v25 = vadd.f32 %v1497_v12, %v1429_v8  ;;  %v1253_v27 = vpop.xlane.xlu1 %1252  ;;  %v854_v28 = vmul.f32 %v1936_v23, %v726_v5  ;;  %v838_v54 = vmul.f32 1.442695, %v3275_v34  ;;  %v3279_v12 = vld [vmem:[#allocation80_spill] sm:$0xff]  ;;  %v730_v55 = vld [vmem:[#allocation3 + $0x60] sm:$0xff] }
 0x319   :  { %v1938_v45 = vpop.eup %1937  ;;  %1955 = vpow2.f32 %v834_v53  ;;  %v1333_v52 = vadd.f32 %v1253_v27, %v853_v13  ;;  %v3277_v53 = vld [vmem:[#allocation81_spill] sm:$0xff]  ;;  %v3281_v20 = vsub.f32 %v3279_v12, %v3280_v6  ;;  %v1431_v27 = vld [vmem:[#allocation2 + $0x28] sm:$0xff] }
 0x31a   :  { %v1940_v15 = vpop.eup %1939  ;;  %1957 = vpow2.f32 %v836_v41  ;;  %1589 = vst.msk [vmem:[%s3021_s2 + $0x18] sm:$0xff] %vm44_vm0, %v1557_v25  ;;  %v1529_v2 = vmul.f32 0.6931472, %v1938_v45  ;;  %v1479_v7 = vld [vmem:[#allocation3 + $0xa8] sm:$0xff]  ;;  %v1464_v40 = vld [vmem:[#allocation3 + $0x30] sm:$0xff]  ;;  %v3278_v16 = vsub.f32 %v3276_v49, %v3277_v53 }
 0x31b   :  { %v1942_v9 = vpop.eup %1941  ;;  %v1499_v39 = vmul.f32 0.6931472, %v1940_v15  ;;  %1959 = vlog2.f32 %v1479_v7  ;;  %1366 = vst.msk [vmem:[#allocation3 + $0x38] sm:$0xff] %vm44_vm0, %v1333_v52  ;;  %v810_v8 = vmul.f32 1.442695, %v3281_v20  ;;  %v3283_v7 = vld [vmem:[#allocation85_spill] sm:$0xff] }
 0x31c   :  { %v1944_v17 = vpop.eup %1943  ;;  %v1573_v3 = vadd.f32 %v1529_v2, %v1445_v31  ;;  %1961 = vlog2.f32 %v1464_v40  ;;  %v1301_v33 = vpop.xlane.xlu1 %1300  ;;  %v855_v61 = vmul.f32 %v1942_v9, %v727_v35  ;;  %v840_v30 = vmul.f32 1.442695, %v3278_v16  ;;  %v3282_v2 = vld [vmem:[#allocation83_spill] sm:$0xff] }
 0x31d   :  { %v1256_v29 = vpop.xlane.xlu0 %1255  ;;  %v1946_v60 = vpop.eup %1945  ;;  %v1558_v10 = vadd.f32 %v1499_v39, %v1430_v22  ;;  %v1349_v14 = vadd.f32 %v1301_v33, %v869_v50  ;;  %1963 = vpow2.f32 %v806_v47  ;;  %v870_v1 = vmul.f32 %v1944_v17, %v742_v58  ;;  %v3286_v17 = vld [vmem:[#allocation86_spill] sm:$0xff]  ;;  %v1447_v58 = vld [vmem:[#allocation2 + $0xa8] sm:$0xff] }
 0x31e   :  { %v1334_v43 = vadd.f32 %v1256_v29, %v854_v28  ;;  %1605 = vst.msk [vmem:[%s3021_s2 + $0x98] sm:$0xff] %vm44_vm0, %v1573_v3  ;;  %v1531_v36 = vmul.f32 0.6931472, %v1946_v60  ;;  %v1480_v38 = vld [vmem:[#allocation3 + $0xb0] sm:$0xff]  ;;  %v1948_v42 = vpop.eup %1947  ;;  %v3284_v40 = vsub.f32 %v3282_v2, %v3283_v7 }
 0x31f   :  { %1590 = vst.msk [vmem:[%s3021_s2 + $0x20] sm:$0xff] %vm44_vm0, %v1558_v10  ;;  %1965 = vlog2.f32 %v1480_v38  ;;  %1382 = vst.msk [vmem:[#allocation3 + $0xb8] sm:$0xff] %vm44_vm0, %v1349_v14  ;;  %v1950_v11 = vpop.eup %1949  ;;  %v871_v26 = vmul.f32 %v1948_v42, %v743_v44  ;;  %v3285_v28 = vld [vmem:[#allocation84_spill] sm:$0xff]  ;;  %v3288_v42 = vld [vmem:[#allocation87_spill] sm:$0xff] }
 0x320   :  { %1367 = vst.msk [vmem:[#allocation3 + $0x40] sm:$0xff] %vm44_vm0, %v1334_v43  ;;  %v1574_v63 = vadd.f32 %v1531_v36, %v1446_v32  ;;  %v1259_v19 = vpop.xlane.xlu1 %1258  ;;  %1967 = vpow2.f32 %v808_v51  ;;  %v856_v5 = vmul.f32 %v1950_v11, %v728_v56  ;;  %v812_v9 = vmul.f32 1.442695, %v3284_v40  ;;  %v1432_v51 = vld [vmem:[#allocation2 + $0x30] sm:$0xff] }
 0x321   :  { %v1304_v21 = vpop.xlane.xlu0 %1303  ;;  %v1952_v4 = vpop.eup %1951  ;;  %v1335_v18 = vadd.f32 %v1259_v19, %v855_v61  ;;  %1969 = vpow2.f32 %v838_v54  ;;  %v3287_v22 = vsub.f32 %v3285_v28, %v3286_v17  ;;  %v3289_v32 = vld [vmem:[#allocation88_spill] sm:$0xff] }
 0x322   :  { %v1350_v37 = vadd.f32 %v1304_v21, %v870_v1  ;;  %v1954_v41 = vpop.eup %1953  ;;  %1606 = vst.msk [vmem:[%s3021_s2 + $0xa0] sm:$0xff] %vm44_vm0, %v1574_v63  ;;  %v1501_v13 = vmul.f32 0.6931472, %v1952_v4  ;;  %v1465_v23 = vld [vmem:[#allocation3 + $0x38] sm:$0xff]  ;;  %v3290_v61 = vsub.f32 %v3288_v42, %v3289_v32  ;;  %v1448_v44 = vld [vmem:[#allocation2 + $0xb0] sm:$0xff]  ;;  %v1450_v32 = vld [vmem:[#allocation2 + $0xc0] sm:$0xff] }
 0x323   :  { %v1956_v25 = vpop.eup %1955  ;;  %1971 = vlog2.f32 %v1465_v23  ;;  %1368 = vst.msk [vmem:[#allocation3 + $0x48] sm:$0xff] %vm44_vm0, %v1335_v18  ;;  %v842_v3 = vmul.f32 1.442695, %v3287_v22  ;;  %v857_v46 = vmul.f32 %v1954_v41, %v729_v59  ;;  %v731_v18 = vld [vmem:[#allocation3 + $0x68] sm:$0xff]  ;;  %v732_v59 = vld [vmem:[#allocation3 + $0x70] sm:$0xff] }
 0x324   :  { %1383 = vst.msk [vmem:[#allocation3 + $0xc0] sm:$0xff] %vm44_vm0, %v1350_v37  ;;  %v1958_v45 = vpop.eup %1957  ;;  %v1559_v52 = vadd.f32 %v1501_v13, %v1431_v27  ;;  %v1307_v15 = vpop.xlane.xlu1 %1306  ;;  %1973 = vpow2.f32 %v840_v30  ;;  %v872_v48 = vmul.f32 %v1956_v25, %v744_v62  ;;  %v844_v1 = vmul.f32 1.442695, %v3290_v61  ;;  %v746_v37 = vld [vmem:[#allocation3 + $0xe0] sm:$0xff]  ;;  %v1433_v25 = vld [vmem:[#allocation2 + $0x38] sm:$0xff] }
 0x325   :  { %v1262_v57 = vpop.xlane.xlu0 %1261  ;;  %v1960_v47 = vpop.eup %1959  ;;  %v1351_v31 = vadd.f32 %v1307_v15, %v871_v26  ;;  %1975 = vpow2.f32 %v810_v8  ;;  %v873_v56 = vmul.f32 %v1958_v45, %v745_v24 }
 0x326   :  { %v1336_v39 = vadd.f32 %v1262_v57, %v856_v5  ;;  %v1962_v50 = vpop.eup %1961  ;;  %1591 = vst.msk [vmem:[%s3021_s2 + $0x28] sm:$0xff] %vm44_vm0, %v1559_v52  ;;  %v1533_v33 = vmul.f32 0.6931472, %v1960_v47  ;;  %v1481_v29 = vld [vmem:[#allocation3 + $0xb8] sm:$0xff]  ;;  %v747_v57 = vld [vmem:[#allocation3 + $0xe8] sm:$0xff] }
 0x327   :  { %v1466_v35 = vld [vmem:[#allocation3 + $0x40] sm:$0xff]  ;;  %v1503_v60 = vmul.f32 0.6931472, %v1962_v50  ;;  %1977 = vlog2.f32 %v1481_v29  ;;  %1384 = vst.msk [vmem:[#allocation3 + $0xc8] sm:$0xff] %vm44_vm0, %v1351_v31  ;;  %v1964_v0 = vpop.eup %1963  ;;  %v1449_v50 = vld [vmem:[#allocation2 + $0xb8] sm:$0xff] }
 0x328   :  { %1369 = vst.msk [vmem:[#allocation3 + $0x50] sm:$0xff] %vm44_vm0, %v1336_v39  ;;  %v1575_v10 = vadd.f32 %v1533_v33, %v1447_v58  ;;  %1979 = vlog2.f32 %v1466_v35  ;;  %v1265_v14 = vpop.xlane.xlu1 %1264  ;;  %v858_v4 = vmul.f32 %v1964_v0, %v730_v55  ;;  %v1434_v33 = vld [vmem:[#allocation2 + $0x40] sm:$0xff] }
 0x329   :  { %v1310_v43 = vpop.xlane.xlu0 %1309  ;;  %v1966_v34 = vpop.eup %1965  ;;  %1981 = vpow2.f32 %v812_v9  ;;  %v1560_v54 = vadd.f32 %v1503_v60, %v1432_v51  ;;  %v1337_v36 = vadd.f32 %v1265_v14, %v857_v46  ;;  %v733_v60 = vld [vmem:[#allocation3 + $0x78] sm:$0xff]  ;;  %v748_v46 = vld [vmem:[#allocation3 + $0xf0] sm:$0xff] }
 0x32a   :  { %v1352_v38 = vadd.f32 %v1310_v43, %v872_v48  ;;  %1983 = vpow2.f32 %v842_v3  ;;  %1607 = vst.msk [vmem:[%s3021_s2 + $0xa8] sm:$0xff] %vm44_vm0, %v1575_v10  ;;  %v1535_v11 = vmul.f32 0.6931472, %v1966_v34  ;;  %v1467_v63 = vld [vmem:[#allocation3 + $0x48] sm:$0xff]  ;;  %v1968_v21 = vpop.eup %1967 }
 0x32b   :  { %v1482_v19 = vld [vmem:[#allocation3 + $0xc0] sm:$0xff]  ;;  %1592 = vst.msk [vmem:[%s3021_s2 + $0x30] sm:$0xff] %vm44_vm0, %v1560_v54  ;;  %1985 = vlog2.f32 %v1467_v63  ;;  %1370 = vst.msk [vmem:[#allocation3 + $0x58] sm:$0xff] %vm44_vm0, %v1337_v36  ;;  %v1970_v49 = vpop.eup %1969  ;;  %v859_v27 = vmul.f32 %v1968_v21, %v731_v18  ;;  %v1435_v34 = vld [vmem:[#allocation2 + $0x48] sm:$0xff] }
 0x32c   :  { %1385 = vst.msk [vmem:[#allocation3 + $0xd0] sm:$0xff] %vm44_vm0, %v1352_v38  ;;  %v1576_v53 = vadd.f32 %v1535_v11, %v1448_v44  ;;  %1987 = vlog2.f32 %v1482_v19  ;;  %v1313_v16 = vpop.xlane.xlu1 %1312  ;;  %v874_v26 = vmul.f32 %v1970_v49, %v746_v37  ;;  %v749_v63 = vld [vmem:[#allocation3 + $0xf8] sm:$0xff] }
 0x32d   :  { %v1268_v30 = vpop.xlane.xlu0 %1267  ;;  %v1972_v41 = vpop.eup %1971  ;;  %v1353_v12 = vadd.f32 %v1313_v16, %v873_v56  ;;  %1989 = vpow2.f32 %v844_v1 }
 0x32e   :  { %v1338_v6 = vadd.f32 %v1268_v30, %v858_v4  ;;  %1608 = vst.msk [vmem:[%s3021_s2 + $0xb0] sm:$0xff] %vm44_vm0, %v1576_v53  ;;  %v1505_v20 = vmul.f32 0.6931472, %v1972_v41  ;;  %v1483_v8 = vld [vmem:[#allocation3 + $0xc8] sm:$0xff]  ;;  %v1974_v23 = vpop.eup %1973  ;;  %v1436_v41 = vld [vmem:[#allocation2 + $0x50] sm:$0xff] }
 0x32f   :  { %v1468_v13 = vld [vmem:[#allocation3 + $0x50] sm:$0xff]  ;;  %1991 = vlog2.f32 %v1483_v8  ;;  %1386 = vst.msk [vmem:[#allocation3 + $0xd8] sm:$0xff] %vm44_vm0, %v1353_v12  ;;  %v1976_v5 = vpop.eup %1975  ;;  %v875_v17 = vmul.f32 %v1974_v23, %v747_v57  ;;  %v1451_v30 = vld [vmem:[#allocation2 + $0xc8] sm:$0xff] }
 0x330   :  { %1371 = vst.msk [vmem:[#allocation3 + $0x60] sm:$0xff] %vm44_vm0, %v1338_v6  ;;  %v1561_v45 = vadd.f32 %v1505_v20, %v1433_v25  ;;  %1993 = vlog2.f32 %v1468_v13  ;;  %v1271_v52 = vpop.xlane.xlu1 %1270  ;;  %v860_v22 = vmul.f32 %v1976_v5, %v732_v59  ;;  %v1437_v5 = vld [vmem:[#allocation2 + $0x58] sm:$0xff] }
 0x331   :  { %v1316_v15 = vpop.xlane.xlu0 %1315  ;;  %v1978_v62 = vpop.eup %1977  ;;  %v1339_v47 = vadd.f32 %v1271_v52, %v859_v27  ;;  %v1452_v52 = vld [vmem:[#allocation2 + $0xd0] sm:$0xff] }
 0x332   :  { %v1354_v2 = vadd.f32 %v1316_v15, %v874_v26  ;;  %v1980_v7 = vpop.eup %1979  ;;  %1593 = vst.msk [vmem:[%s3021_s2 + $0x38] sm:$0xff] %vm44_vm0, %v1561_v45  ;;  %v1537_v40 = vmul.f32 0.6931472, %v1978_v62  ;;  %v1469_v9 = vld [vmem:[#allocation3 + $0x58] sm:$0xff] }
 0x333   :  { %v1484_v31 = vld [vmem:[#allocation3 + $0xd0] sm:$0xff]  ;;  %v1982_v39 = vpop.eup %1981  ;;  %v1507_v28 = vmul.f32 0.6931472, %v1980_v7  ;;  %1995 = vlog2.f32 %v1469_v9  ;;  %1372 = vst.msk [vmem:[#allocation3 + $0x68] sm:$0xff] %vm44_vm0, %v1339_v47 }
 0x334   :  { %1387 = vst.msk [vmem:[#allocation3 + $0xe0] sm:$0xff] %vm44_vm0, %v1354_v2  ;;  %v1984_v3 = vpop.eup %1983  ;;  %v1577_v29 = vadd.f32 %v1537_v40, %v1449_v50  ;;  %1997 = vlog2.f32 %v1484_v31  ;;  %v1319_v35 = vpop.xlane.xlu1 %1318  ;;  %v861_v36 = vmul.f32 %v1982_v39, %v733_v60  ;;  %v1453_v40 = vld [vmem:[#allocation2 + $0xd8] sm:$0xff]  ;;  %v1438_v31 = vld [vmem:[#allocation2 + $0x60] sm:$0xff] }
 0x335   :  { %v1274_v58 = vpop.xlane.xlu0 %1273  ;;  %v1986_v48 = vpop.eup %1985  ;;  %v1562_v0 = vadd.f32 %v1507_v28, %v1434_v33  ;;  %v1355_v51 = vadd.f32 %v1319_v35, %v875_v17  ;;  %v876_v38 = vmul.f32 %v1984_v3, %v748_v46  ;;  %v1439_v33 = vld [vmem:[#allocation2 + $0x68] sm:$0xff]  ;;  %v1454_v35 = vld [vmem:[#allocation2 + $0xe0] sm:$0xff] }
 0x336   :  { %v1340_v10 = vadd.f32 %v1274_v58, %v860_v22  ;;  %v1988_v14 = vpop.eup %1987  ;;  %1609 = vst.msk [vmem:[%s3021_s2 + $0xb8] sm:$0xff] %vm44_vm0, %v1577_v29  ;;  %v1509_v43 = vmul.f32 0.6931472, %v1986_v48  ;;  %v1485_v24 = vld [vmem:[#allocation3 + $0xd8] sm:$0xff] }
 0x337   :  { %v1470_v55 = vld [vmem:[#allocation3 + $0x60] sm:$0xff]  ;;  %1594 = vst.msk [vmem:[%s3021_s2 + $0x40] sm:$0xff] %vm44_vm0, %v1562_v0  ;;  %v1539_v54 = vmul.f32 0.6931472, %v1988_v14  ;;  %1999 = vlog2.f32 %v1485_v24  ;;  %1388 = vst.msk [vmem:[#allocation3 + $0xe8] sm:$0xff] %vm44_vm0, %v1355_v51  ;;  %v1990_v42 = vpop.eup %1989  ;;  %v1455_v51 = vld [vmem:[#allocation2 + $0xe8] sm:$0xff] }
 0x338   :  { %1373 = vst.msk [vmem:[#allocation3 + $0x70] sm:$0xff] %vm44_vm0, %v1340_v10  ;;  %v1563_v61 = vadd.f32 %v1509_v43, %v1435_v34  ;;  %2001 = vlog2.f32 %v1470_v55  ;;  %v1277_v1 = vpop.xlane.xlu1 %1276  ;;  %v877_v37 = vmul.f32 %v1990_v42, %v749_v63  ;;  %v1440_v14 = vld [vmem:[#allocation2 + $0x70] sm:$0xff]  ;;  %v1457_v63 = vld [vmem:[#allocation2 + $0xf8] sm:$0xff] }
 0x339   :  { %v1322_v11 = vpop.xlane.xlu0 %1321  ;;  %v1992_v19 = vpop.eup %1991  ;;  %v1578_v21 = vadd.f32 %v1539_v54, %v1450_v32  ;;  %v1341_v44 = vadd.f32 %v1277_v1, %v861_v36  ;;  %v1441_v36 = vld [vmem:[#allocation2 + $0x78] sm:$0xff]  ;;  %v1456_v42 = vld [vmem:[#allocation2 + $0xf0] sm:$0xff] }
 0x33a   :  { %v1356_v56 = vadd.f32 %v1322_v11, %v876_v38  ;;  %v1994_v4 = vpop.eup %1993  ;;  %1595 = vst.msk [vmem:[%s3021_s2 + $0x48] sm:$0xff] %vm44_vm0, %v1563_v61  ;;  %v1541_v49 = vmul.f32 0.6931472, %v1992_v19  ;;  %v1471_v53 = vld [vmem:[#allocation3 + $0x68] sm:$0xff] }
 0x33b   :  { %v1486_v16 = vld [vmem:[#allocation3 + $0xe0] sm:$0xff]  ;;  %1610 = vst.msk [vmem:[%s3021_s2 + $0xc0] sm:$0xff] %vm44_vm0, %v1578_v21  ;;  %v1511_v18 = vmul.f32 0.6931472, %v1994_v4  ;;  %2003 = vlog2.f32 %v1471_v53  ;;  %1374 = vst.msk [vmem:[#allocation3 + $0x78] sm:$0xff] %vm44_vm0, %v1341_v44 }
 0x33c   :  { %1389 = vst.msk [vmem:[#allocation3 + $0xf0] sm:$0xff] %vm44_vm0, %v1356_v56  ;;  %v1579_v12 = vadd.f32 %v1541_v49, %v1451_v30  ;;  %2005 = vlog2.f32 %v1486_v16  ;;  %v1325_v6 = vpop.xlane.xlu1 %1324 }
 0x33d   :  { %v1996_v20 = vpop.eup %1995  ;;  %v1564_v8 = vadd.f32 %v1511_v18, %v1436_v41  ;;  %v1357_v13 = vadd.f32 %v1325_v6, %v877_v37 }
 0x33e   :  { %v1998_v23 = vpop.eup %1997  ;;  %1611 = vst.msk [vmem:[%s3021_s2 + $0xc8] sm:$0xff] %vm44_vm0, %v1579_v12  ;;  %v1513_v25 = vmul.f32 0.6931472, %v1996_v20  ;;  %v1487_v27 = vld [vmem:[#allocation3 + $0xe8] sm:$0xff] }
 0x33f   :  { %v1472_v26 = vld [vmem:[#allocation3 + $0x70] sm:$0xff]  ;;  %1596 = vst.msk [vmem:[%s3021_s2 + $0x50] sm:$0xff] %vm44_vm0, %v1564_v8  ;;  %v1543_v45 = vmul.f32 0.6931472, %v1998_v23  ;;  %2007 = vlog2.f32 %v1487_v27  ;;  %1390 = vst.msk [vmem:[#allocation3 + $0xf8] sm:$0xff] %vm44_vm0, %v1357_v13 }
 0x340   :  { %v1565_v15 = vadd.f32 %v1513_v25, %v1437_v5  ;;  %2009 = vlog2.f32 %v1472_v26 }
 0x341   :  { %v2000_v57 = vpop.eup %1999  ;;  %v1580_v59 = vadd.f32 %v1543_v45, %v1452_v52 }
 0x342   :  { %v2002_v62 = vpop.eup %2001  ;;  %1597 = vst.msk [vmem:[%s3021_s2 + $0x58] sm:$0xff] %vm44_vm0, %v1565_v15  ;;  %v1545_v47 = vmul.f32 0.6931472, %v2000_v57  ;;  %v1473_v2 = vld [vmem:[#allocation3 + $0x78] sm:$0xff] }
 0x343   :  { %v1488_v7 = vld [vmem:[#allocation3 + $0xf0] sm:$0xff]  ;;  %1612 = vst.msk [vmem:[%s3021_s2 + $0xd0] sm:$0xff] %vm44_vm0, %v1580_v59  ;;  %v1515_v9 = vmul.f32 0.6931472, %v2002_v62  ;;  %2011 = vlog2.f32 %v1473_v2 }
 0x344   :  { %v1581_v39 = vadd.f32 %v1545_v47, %v1453_v40  ;;  %2013 = vlog2.f32 %v1488_v7 }
 0x345   :  { %v2004_v50 = vpop.eup %2003  ;;  %v1566_v28 = vadd.f32 %v1515_v9, %v1438_v31 }
 0x346   :  { %v2006_v17 = vpop.eup %2005  ;;  %1613 = vst.msk [vmem:[%s3021_s2 + $0xd8] sm:$0xff] %vm44_vm0, %v1581_v39  ;;  %v1517_v22 = vmul.f32 0.6931472, %v2004_v50  ;;  %v1489_v3 = vld [vmem:[#allocation3 + $0xf8] sm:$0xff] }
 0x347   :  { %1598 = vst.msk [vmem:[%s3021_s2 + $0x60] sm:$0xff] %vm44_vm0, %v1566_v28  ;;  %v1547_v29 = vmul.f32 0.6931472, %v2006_v17  ;;  %2015 = vlog2.f32 %v1489_v3 }
 0x348   :  { %v1567_v58 = vadd.f32 %v1517_v22, %v1439_v33 }
 0x349   :  { %v2008_v60 = vpop.eup %2007  ;;  %v1582_v46 = vadd.f32 %v1547_v29, %v1454_v35 }
 0x34a   :  { %v2010_v48 = vpop.eup %2009  ;;  %1599 = vst.msk [vmem:[%s3021_s2 + $0x68] sm:$0xff] %vm44_vm0, %v1567_v58  ;;  %v1549_v0 = vmul.f32 0.6931472, %v2008_v60 }
 0x34b   :  { %1614 = vst.msk [vmem:[%s3021_s2 + $0xe0] sm:$0xff] %vm44_vm0, %v1582_v46  ;;  %v1519_v10 = vmul.f32 0.6931472, %v2010_v48 }
 0x34c   :  { %v1583_v43 = vadd.f32 %v1549_v0, %v1455_v51 }
 0x34d   :  { %v2012_v24 = vpop.eup %2011  ;;  %v1568_v55 = vadd.f32 %v1519_v10, %v1440_v14 }
 0x34e   :  { %v2014_v34 = vpop.eup %2013  ;;  %1615 = vst.msk [vmem:[%s3021_s2 + $0xe8] sm:$0xff] %vm44_vm0, %v1583_v43  ;;  %v1521_v54 = vmul.f32 0.6931472, %v2012_v24 }
 0x34f   :  { %1600 = vst.msk [vmem:[%s3021_s2 + $0x70] sm:$0xff] %vm44_vm0, %v1568_v55  ;;  %v1551_v38 = vmul.f32 0.6931472, %v2014_v34 }
 0x350   :  { %v1569_v32 = vadd.f32 %v1521_v54, %v1441_v36 }
 0x351   :  { %v2016_v61 = vpop.eup %2015  ;;  %v1584_v1 = vadd.f32 %v1551_v38, %v1456_v42 }
 0x352   :  { %1601 = vst.msk [vmem:[%s3021_s2 + $0x78] sm:$0xff] %vm44_vm0, %v1569_v32  ;;  %v1553_v11 = vmul.f32 0.6931472, %v2016_v61 }
 0x353   :  { %1616 = vst.msk [vmem:[%s3021_s2 + $0xf0] sm:$0xff] %vm44_vm0, %v1584_v1 }
 0x354   :  { %v1585_v19 = vadd.f32 %v1553_v11, %v1457_v63 }
 0x356   :  { %1617 = vst.msk [vmem:[%s3021_s2 + $0xf8] sm:$0xff] %vm44_vm0, %v1585_v19 }
 0x357   :  { %1622 = vsyncpa [#allocation5], 1 }
 0x358   :  { %1623 = vsyncpa [#allocation7], 1 }

</bundles_post_ra>
